<compile_context>
chip_gen: v7x
topology: tpu7x:2x2x1
jax: 0.10.0
libtpu: 0.0.40
codegen_flags: <defaults>
</compile_context>

<pallas_src>
import functools

import numpy as np
import jax
import jax.numpy as jnp
from jax.experimental import pallas as pl
from jax.experimental.pallas import tpu as pltpu


# --------------------------------- helpers ---------------------------------- #

def _round_up(x, m):
    return ((x + m - 1) // m) * m


def _row_tiling(M, bytes_per_row):
    """Pick (padded_M, row_tile) for a 1-D 'parallel' grid over M.

    Large tiles amortize the ~600-cycle per-grid-step pipeline overhead; the byte
    cap keeps double-buffered blocks small even on v7x (64 MiB VMEM, 32 MiB scoped
    default); >= 2 grid steps when M is large enough lets both v7x TCs work.
    """
    cap = max(8, ((2 * 1024 * 1024) // max(int(bytes_per_row), 1)) // 8 * 8)
    if M >= 1024:
        tm = min(512, cap)
    elif M >= 512:
        tm = min(256, cap)
    else:
        tm = min(_round_up(M, 8), cap)
    Mp = _round_up(M, tm)
    return Mp, tm


def _nchw_to_internal(x):
    if x.ndim == 4:
        return jnp.transpose(x, (0, 2, 3, 1))
    if x.ndim == 5:
        return jnp.transpose(x, (0, 1, 3, 4, 2))
    return x


def _internal_to_nchw(x):
    if x.ndim == 4:
        return jnp.transpose(x, (0, 3, 1, 2))
    if x.ndim == 5:
        return jnp.transpose(x, (0, 1, 4, 2, 3))
    return x


# ------------------------------ Pallas kernels ------------------------------ #

@functools.lru_cache(maxsize=None)
def _make_mm_kernel(n_branches, with_scale):
    """O = sum_b A_b @ B_b  [* D]  — MXU matmuls with a fused elementwise epilogue."""
    def kernel(*refs):
        o_ref = refs[-1]
        acc = jnp.dot(refs[0][...], refs[1][...],
                      preferred_element_type=jnp.float32)
        for b in range(1, n_branches):
            acc = acc + jnp.dot(refs[2 * b][...], refs[2 * b + 1][...],
                                preferred_element_type=jnp.float32)
        if with_scale:
            acc = acc * refs[2 * n_branches][...]
        o_ref[...] = acc.astype(o_ref.dtype)
    return kernel


def fused_matmul(pairs, scale=None):
    """sum_b A_b @ B_b (optionally * scale), all producing (M, Np).

    A_b: (M, K_b) with K_b padded to a multiple of 8 by the caller.
    B_b: (K_b, Np) with Np a multiple of 128 (lane-dense output).
    scale: optional (M, Np) elementwise epilogue (fused DualReLU multiply).
    Only M is tiled; K and N stay whole (small and lane/sublane aligned here).
    """
    M = pairs[0][0].shape[0]
    Np = pairs[0][1].shape[1]
    out_dtype = pairs[0][0].dtype
    itemsize = np.dtype(out_dtype).itemsize
    widest = max(max(a.shape[1] for a, _ in pairs), Np)
    Mp, tm = _row_tiling(M, widest * itemsize)

    in_arrays, in_specs = [], []
    for a, b in pairs:
        K = a.shape[1]
        if Mp != M:
            a = jnp.pad(a, ((0, Mp - M), (0, 0)))
        in_arrays += [a, b]
        in_specs += [pl.BlockSpec((tm, K), lambda i: (i, 0)),
                     pl.BlockSpec((K, Np), lambda i: (0, 0))]
    with_scale = scale is not None
    if with_scale:
        if Mp != M:
            scale = jnp.pad(scale, ((0, Mp - M), (0, 0)))
        in_arrays.append(scale)
        in_specs.append(pl.BlockSpec((tm, Np), lambda i: (i, 0)))

    out = pl.pallas_call(
        _make_mm_kernel(len(pairs), with_scale),
        out_shape=jax.ShapeDtypeStruct((Mp, Np), out_dtype),
        grid=(Mp // tm,),
        in_specs=in_specs,
        out_specs=pl.BlockSpec((tm, Np), lambda i: (i, 0)),
        compiler_params=pltpu.CompilerParams(dimension_semantics=("parallel",)),
    )(*in_arrays)
    return out[:M] if Mp != M else out


def _mul_kernel(x_ref, d_ref, o_ref):
    o_ref[...] = x_ref[...] * d_ref[...]


def pallas_mul(x, d):
    """Elementwise x * d — fallback when the multiply can't be fused into a
    preceding matmul epilogue (e.g. DualReLU with I_ind row gather)."""
    if tuple(d.shape) != tuple(x.shape):
        d = jnp.broadcast_to(d, x.shape)
    shape = x.shape
    total = int(np.prod(shape))
    LANE = 128
    rows = -(-total // LANE)
    Mp, tm = _row_tiling(rows, LANE * np.dtype(x.dtype).itemsize)
    pad = Mp * LANE - total
    xf = jnp.pad(x.reshape(-1), (0, pad)).reshape(Mp, LANE)
    df = jnp.pad(d.astype(x.dtype).reshape(-1), (0, pad)).reshape(Mp, LANE)
    out = pl.pallas_call(
        _mul_kernel,
        out_shape=jax.ShapeDtypeStruct((Mp, LANE), x.dtype),
        grid=(Mp // tm,),
        in_specs=[pl.BlockSpec((tm, LANE), lambda i: (i, 0)),
                  pl.BlockSpec((tm, LANE), lambda i: (i, 0))],
        out_specs=pl.BlockSpec((tm, LANE), lambda i: (i, 0)),
        compiler_params=pltpu.CompilerParams(dimension_semantics=("parallel",)),
    )(xf, df)
    return out.reshape(-1)[:total].reshape(shape)


# --------------------- matrix-form metadata & reconstruction ---------------- #

def _reconstruct(out_mat, meta):
    kind = meta[0]
    if kind == 'conv':
        _, batched, n, nb, OH, OW, OC, _Np, _ok = meta
        out = out_mat[:, :OC].reshape(nb, OH, OW, OC)
        if batched:
            out = out.reshape(n, nb // n, OH, OW, OC)
        return out
    _, lead, OF, _Np, _ok = meta
    return out_mat[:, :OF].reshape(*lead, OF)


class _MatAffine:
    """Shared machinery for layers whose affine() is (a sum of) matmuls."""

    def affine(self, *xs):
        pairs, meta = self.affine_mat(*xs)
        return _reconstruct(fused_matmul(pairs), meta)

    def affine_fused_with(self, relu, *xs):
        """affine(xs) with relu's elementwise d fused into the matmul epilogue.
        Returns None when the fusion is not applicable (caller falls back)."""
        d_mat = getattr(relu, 'd_mat', None)
        d_int = getattr(relu, 'd_int', None)
        if d_mat is None or d_int is None:
            return None
        sh = self.out_mat_shape(*xs)
        if sh is None:
            return None
        M, Np, ok, out_ishape = sh
        if (not ok) or tuple(d_mat.shape) != (M, Np) \
                or tuple(d_int.shape) != tuple(out_ishape):
            return None
        pm = self.affine_mat(*xs)
        if pm is None:
            return None
        pairs, meta = pm
        return _reconstruct(fused_matmul(pairs, scale=d_mat), meta)


# --------------------------- Dual modules (forward) -------------------------- #

class DualLinear(_MatAffine):
    """F.linear(x, W) (no bias).  Weight pre-transposed/padded once at init."""

    def __init__(self, weight):
        weight = jnp.asarray(weight)
        self.weight = weight
        out_f, in_f = weight.shape
        self.out_features, self.in_features = out_f, in_f
        self.Kp = _round_up(in_f, 8)
        self.Np = _round_up(out_f, 128)
        self.w_mat = jnp.pad(weight.T, ((0, self.Kp - in_f), (0, self.Np - out_f)))

    def out_mat_shape(self, *xs):
        x = xs[-1]
        lead = tuple(x.shape[:-1])
        M = int(np.prod(lead)) if lead else 1
        return M, self.Np, x.ndim == 2, lead + (self.out_features,)

    def affine_mat(self, *xs):
        x = xs[-1]
        lead = tuple(x.shape[:-1])
        x2d = x.reshape(-1, x.shape[-1])
        if x.shape[-1] != self.Kp:
            x2d = jnp.pad(x2d, ((0, 0), (0, self.Kp - x.shape[-1])))
        meta = ('lin', lead, self.out_features, self.Np, x.ndim == 2)
        return [(x2d, self.w_mat)], meta


class DualConv2d(_MatAffine):
    """F.conv2d(x, W, stride, padding) (no bias) via im2col + Pallas matmul.
    Activations are NHWC internally; weight pre-flattened to (KH*KW*C, OC) with
    K padded to a multiple of 8 and OC padded to a multiple of 128 (lane-dense)."""

    def __init__(self, weight, stride=(1, 1), padding=(0, 0)):
        weight = jnp.asarray(weight)
        self.weight = weight
        if isinstance(stride, int):
            stride = (stride, stride)
        if isinstance(padding, int):
            padding = (padding, padding)
        self.stride, self.padding = tuple(stride), tuple(padding)
        OC, C, KH, KW = weight.shape
        self.OC, self.C, self.KH, self.KW = OC, C, KH, KW
        self.Kc = KH * KW * C
        self.Kp = _round_up(self.Kc, 8)
        self.Np = _round_up(OC, 128)
        # (OC,C,KH,KW) -> (KH*KW*C, OC), column order (kh, kw, c) to match the
        # NHWC im2col below; zero-padded to (Kp, Np).
        w = jnp.transpose(weight, (0, 2, 3, 1)).reshape(OC, self.Kc).T
        self.w_mat = jnp.pad(w, ((0, self.Kp - self.Kc), (0, self.Np - OC)))

    def _out_hw(self, H, W):
        OH = (H + 2 * self.padding[0] - self.KH) // self.stride[0] + 1
        OW = (W + 2 * self.padding[1] - self.KW) // self.stride[1] + 1
        return OH, OW

    def out_mat_shape(self, *xs):
        x = xs[-1]
        if x.ndim == 5:
            n, k, H, W, _ = x.shape
            nb = n * k
            OH, OW = self._out_hw(H, W)
            return nb * OH * OW, self.Np, False, (n, k, OH, OW, self.OC)
        nb, H, W, _ = x.shape
        OH, OW = self._out_hw(H, W)
        return nb * OH * OW, self.Np, True, (nb, OH, OW, self.OC)

    def affine_mat(self, *xs):
        x = xs[-1]
        batched = x.ndim == 5
        n = x.shape[0] if batched else 0
        if batched:
            x = x.reshape(-1, *x.shape[2:])
        nb, H, W, _C = x.shape
        OH, OW = self._out_hw(H, W)
        ph, pw = self.padding
        sh, sw = self.stride
        xp = jnp.pad(x, ((0, 0), (ph, ph), (pw, pw), (0, 0)))
        patches = [xp[:, i:i + sh * OH:sh, j:j + sw * OW:sw, :]
                   for i in range(self.KH) for j in range(self.KW)]
        col = jnp.concatenate(patches, axis=-1).reshape(nb * OH * OW, self.Kc)
        if self.Kp != self.Kc:
            col = jnp.pad(col, ((0, 0), (0, self.Kp - self.Kc)))
        meta = ('conv', batched, n, nb, OH, OW, self.OC, self.Np, not batched)
        return [(col, self.w_mat)], meta


class DualReLU:
    """z -> d * z (elementwise).  d is pre-flattened into a lane-dense
    (rows, round_up(C,128)) matrix so the multiply can be fused into the
    preceding affine layer's matmul epilogue."""

    def __init__(self, d):
        d = jnp.asarray(d)
        self.d = d
        self.d_int = _nchw_to_internal(d)            # NHWC for 4-D, unchanged else
        if d.ndim == 4:
            N, C, H, W = d.shape
            mat, cols = self.d_int.reshape(N * H * W, C), C
        elif d.ndim == 2:
            mat, cols = d, d.shape[1]
        else:
            mat, cols = None, 0
        if mat is not None:
            Cp = _round_up(cols, 128)
            self.d_mat = jnp.pad(mat, ((0, 0), (0, Cp - cols)))
        else:
            self.d_mat = None

    def affine(self, *xs, I_ind=None):
        x = xs[-1]
        d = self.d_int
        if x.ndim > d.ndim:
            d = d[:, None]
        if I_ind is not None:
            d = jnp.take(d, I_ind[:, 0], axis=0)     # row gather in glue
        return pallas_mul(x, d)

    def affine_transpose(self, *xs):
        return self.affine(*xs)


class DualDense(_MatAffine):
    """Sum of branch affines; all matmul branches are accumulated inside ONE
    Pallas call (VMEM-resident accumulator) whenever their outputs line up."""

    def __init__(self, duals):
        self.duals = list(duals)

    def _branches(self, xs):
        duals = self.duals[-min(len(xs), len(self.duals)):]
        start = len(xs) - len(duals)
        return [(start + j, W) for j, W in enumerate(duals) if W is not None]

    def out_mat_shape(self, *xs):
        shapes = []
        for i, W in self._branches(xs):
            if not hasattr(W, 'out_mat_shape'):
                return None
            s = W.out_mat_shape(*xs[:i + 1])
            if s is None:
                return None
            shapes.append(s)
        if not shapes:
            return None
        M0, Np0, _, ish0 = shapes[0]
        for M, Np, _, ish in shapes[1:]:
            if (M, Np, tuple(ish)) != (M0, Np0, tuple(ish0)):
                return None
        return M0, Np0, all(ok for _, _, ok, _ in shapes), ish0

    def affine_mat(self, *xs):
        branches = self._branches(xs)
        if not branches:
            return None
        pairs, meta0 = [], None
        for i, W in branches:
            if not hasattr(W, 'affine_mat'):
                return None
            pm = W.affine_mat(*xs[:i + 1])
            if pm is None:
                return None
            p, m = pm
            if meta0 is None:
                meta0 = m
            elif m != meta0:
                return None
            pairs += p
        return pairs, meta0

    def affine(self, *xs):
        pm = self.affine_mat(*xs)
        if pm is None:                               # general fallback
            out = 0
            for i, W in self._branches(xs):
                out = out + W.affine(*xs[:i + 1])
            return out
        pairs, meta = pm
        return _reconstruct(fused_matmul(pairs), meta)


class DualSequential:
    """Forward pass of the dual network.  Mirrors the PyTorch dispatch loop, with
    a peephole that fuses a DualReLU into the preceding affine layer's matmul
    epilogue whenever the pre-ReLU intermediate is provably unused downstream."""

    def __init__(self, dual_layers, net=None):
        self.dual_layers = list(dual_layers)
        self.net = net

    def _pre_relu_needed(self, t):
        """Would zs[t] (the pre-ReLU output of dual_layers[t]) be consumed by any
        layer after the DualReLU at t+1?  Non-Dense layers only read zs[-1]."""
        p = t
        layers = self.dual_layers
        for q in range(t + 2, len(layers)):
            l = layers[q]
            if not isinstance(l, DualDense):
                continue
            nd = len(l.duals)
            used = min(q, nd)                         # xs has length q at layer q
            lo = q - used                             # duals_used[j] <-> xs[lo + j]
            j = p - lo
            if 0 <= j < used and l.duals[nd - used + j] is not None:
                return True
            for jj in range(max(j + 1, 0), used):     # nested Dense may reach back
                if isinstance(l.duals[nd - used + jj], DualDense):
                    return True
        return False

    def forward(self, x, I_ind=None):
        is_conv_input = hasattr(x, 'ndim') and x.ndim >= 4
        zs = [_nchw_to_internal(x) if is_conv_input else x]
        layers = self.dual_layers
        t = 1
        while t < len(layers):
            l = layers[t]
            nxt = layers[t + 1] if t + 1 < len(layers) else None
            if (I_ind is None and isinstance(nxt, DualReLU)
                    and hasattr(l, 'affine_fused_with')
                    and not self._pre_relu_needed(t)):
                fused = l.affine_fused_with(nxt, *zs)
                if fused is not None:
                    zs.append(None)      # pre-ReLU slot (statically proven unused)
                    zs.append(fused)     # post-ReLU activation
                    t += 2
                    continue
            if isinstance(l, DualDense):
                zs.append(l.affine(*zs))
            elif isinstance(l, DualReLU):
                zs.append(l.affine(zs[-1], I_ind=I_ind))
            else:
                zs.append(l.affine(zs[-1]))
            t += 1
        out = zs[-1]
        if is_conv_input and hasattr(out, 'ndim') and out.ndim >= 4:
            out = _internal_to_nchw(out)
        return out

    __call__ = forward


# ------------------------------------ main ----------------------------------- #

if __name__ == "__main__":
    key = jax.random.PRNGKey(0)
    ks = jax.random.split(key, 10)

    # Conv/ReLU/Dense stack (input NCHW = (2, 4, 16, 16))
    x = jax.random.normal(ks[0], (2, 4, 16, 16), jnp.float32)
    w1 = jax.random.normal(ks[1], (8, 4, 3, 3), jnp.float32) * 0.1
    w2 = jax.random.normal(ks[2], (8, 8, 3, 3), jnp.float32) * 0.1
    d1 = jax.random.uniform(ks[3], (2, 8, 16, 16), jnp.float32)
    d2 = jax.random.uniform(ks[4], (2, 8, 16, 16), jnp.float32)
    w_skip = jax.random.normal(ks[5], (8, 4, 3, 3), jnp.float32) * 0.1
    w_last = jax.random.normal(ks[6], (8, 8, 3, 3), jnp.float32) * 0.1

    dense = DualDense([DualConv2d(w_skip, (1, 1), (1, 1)), None, None, None,
                       DualConv2d(w_last, (1, 1), (1, 1))])
    model = DualSequential(
        [None,                                   # dual_layers[0] is skipped by forward
         DualConv2d(w1, (1, 1), (1, 1)),
         DualReLU(d1),
         DualConv2d(w2, (1, 1), (1, 1)),
         DualReLU(d2),
         dense],
        net=None)

    out = jax.block_until_ready(jax.jit(model.forward)(x))

    # pure-JAX reference
    def rconv(xx, ww):
        return jax.lax.conv_general_dilated(
            xx, ww, (1, 1), [(1, 1), (1, 1)],
            dimension_numbers=("NCHW", "OIHW", "NCHW"),
            precision=jax.lax.Precision.HIGHEST)

    z1 = rconv(x, w1)
    z2 = d1 * z1
    z3 = rconv(z2, w2)
    z4 = d2 * z3
    ref = rconv(x, w_skip) + rconv(z4, w_last)
    assert out.shape == ref.shape == (2, 8, 16, 16)
    np.testing.assert_allclose(np.asarray(out), np.asarray(ref), rtol=1e-2, atol=1e-2)

    # Linear/ReLU stack to exercise DualLinear (F.linear, no bias) + fused epilogue
    x_lin = jax.random.normal(ks[7], (2, 32), jnp.float32)
    wl1 = jax.random.normal(ks[8], (64, 32), jnp.float32) * 0.1
    wl2 = jax.random.normal(ks[9], (16, 64), jnp.float32) * 0.1
    dl = jax.random.uniform(jax.random.PRNGKey(42), (2, 64), jnp.float32)
    model2 = DualSequential([None, DualLinear(wl1), DualReLU(dl), DualLinear(wl2)])
    out2 = jax.block_until_ready(jax.jit(model2.forward)(x_lin))
    ref2 = ((x_lin @ wl1.T) * dl) @ wl2.T
    np.testing.assert_allclose(np.asarray(out2), np.asarray(ref2), rtol=1e-2, atol=1e-2)

    # Standalone-ReLU stack to exercise the unfused pallas_mul fallback path
    x3 = jax.random.normal(jax.random.PRNGKey(7), (2, 8, 16, 16), jnp.float32)
    model3 = DualSequential([None, DualReLU(d1)])
    out3 = jax.block_until_ready(jax.jit(model3.forward)(x3))
    np.testing.assert_allclose(np.asarray(out3), np.asarray(d1 * x3),
                               rtol=1e-2, atol=1e-2)

    print("KERNEL_OK")
</pallas_src>

<mosaic_0001>
module attributes {stable_mosaic.version = 11 : i64} {
  func.func @kernel(%arg0: i32, %arg1: memref<256x40xf32, #tpu.memory_space<vmem>>, %arg2: memref<40x128xf32, #tpu.memory_space<vmem>>, %arg3: memref<256x128xf32, #tpu.memory_space<vmem>>, %arg4: memref<256x128xf32, #tpu.memory_space<vmem>>) attributes {dimension_semantics = [#tpu.dimension_semantics<parallel>], iteration_bounds = array<i64: 2>, scalar_prefetch = 0 : i64, scratch_operands = 0 : i64, tpu.core_type = #tpu.core_type<tc>, window_params = [{transform_indices = @transform_0, window_bounds = array<i64: 256, 40>}, {pipeline_mode = #tpu.pipeline_mode<synchronous>, transform_indices = @transform_1, window_bounds = array<i64: 40, 128>}, {transform_indices = @transform_2, window_bounds = array<i64: 256, 128>}, {transform_indices = @transform_3, window_bounds = array<i64: 256, 128>}]} {
    %c0 = arith.constant 0 : index
    %c0_0 = arith.constant 0 : index
    %0 = vector.load %arg1[%c0, %c0_0] : memref<256x40xf32, #tpu.memory_space<vmem>>, vector<256x40xf32>
    %c0_1 = arith.constant 0 : index
    %c0_2 = arith.constant 0 : index
    %1 = vector.load %arg2[%c0_1, %c0_2] : memref<40x128xf32, #tpu.memory_space<vmem>>, vector<40x128xf32>
    %cst = arith.constant dense<0.000000e+00> : vector<256x128xf32>
    %2 = tpu.matmul %0, %1, %cst {dimension_numbers = #tpu.dot_dimension_numbers<[1], [0], [0], [1], [0, 0, 1, 1], [], []>} : vector<256x40xf32>, vector<40x128xf32>, vector<256x128xf32> -> vector<256x128xf32>
    %c0_3 = arith.constant 0 : index
    %c0_4 = arith.constant 0 : index
    %3 = vector.load %arg3[%c0_3, %c0_4] : memref<256x128xf32, #tpu.memory_space<vmem>>, vector<256x128xf32>
    %4 = arith.mulf %2, %3 : vector<256x128xf32>
    %c0_5 = arith.constant 0 : index
    %c0_6 = arith.constant 0 : index
    %5 = vector.load %arg4[%c0_5, %c0_6] : memref<256x128xf32, #tpu.memory_space<vmem>>, vector<256x128xf32>
    tpu.vector_store %arg4[%c0_5, %c0_6], %4 {strides = array<i32>} : memref<256x128xf32, #tpu.memory_space<vmem>>, vector<256x128xf32>,
    return
  }
  func.func @transform_0(%arg0: i32) -> (i32, i32) {
    %c0_i32 = arith.constant 0 : i32
    %c0_i32_0 = arith.constant 0 : i32
    return %arg0, %c0_i32 : i32, i32
  }
  func.func @transform_1(%arg0: i32) -> (i32, i32) {
    %c0_i32 = arith.constant 0 : i32
    %c0_i32_0 = arith.constant 0 : i32
    %c0_i32_1 = arith.constant 0 : i32
    return %c0_i32, %c0_i32_0 : i32, i32
  }
  func.func @transform_2(%arg0: i32) -> (i32, i32) {
    %c0_i32 = arith.constant 0 : i32
    %c0_i32_0 = arith.constant 0 : i32
    return %arg0, %c0_i32 : i32, i32
  }
  func.func @transform_3(%arg0: i32) -> (i32, i32) {
    %c0_i32 = arith.constant 0 : i32
    %c0_i32_0 = arith.constant 0 : i32
    return %arg0, %c0_i32 : i32, i32
  }
}

module attributes {stable_mosaic.version = 11 : i64} {
  func.func @kernel(%arg0: i32, %arg1: memref<256x72xf32, #tpu.memory_space<vmem>>, %arg2: memref<72x128xf32, #tpu.memory_space<vmem>>, %arg3: memref<256x128xf32, #tpu.memory_space<vmem>>, %arg4: memref<256x128xf32, #tpu.memory_space<vmem>>) attributes {dimension_semantics = [#tpu.dimension_semantics<parallel>], iteration_bounds = array<i64: 2>, scalar_prefetch = 0 : i64, scratch_operands = 0 : i64, tpu.core_type = #tpu.core_type<tc>, window_params = [{transform_indices = @transform_0, window_bounds = array<i64: 256, 72>}, {pipeline_mode = #tpu.pipeline_mode<synchronous>, transform_indices = @transform_1, window_bounds = array<i64: 72, 128>}, {transform_indices = @transform_2, window_bounds = array<i64: 256, 128>}, {transform_indices = @transform_3, window_bounds = array<i64: 256, 128>}]} {
    %c0 = arith.constant 0 : index
    %c0_0 = arith.constant 0 : index
    %0 = vector.load %arg1[%c0, %c0_0] : memref<256x72xf32, #tpu.memory_space<vmem>>, vector<256x72xf32>
    %c0_1 = arith.constant 0 : index
    %c0_2 = arith.constant 0 : index
    %1 = vector.load %arg2[%c0_1, %c0_2] : memref<72x128xf32, #tpu.memory_space<vmem>>, vector<72x128xf32>
    %cst = arith.constant dense<0.000000e+00> : vector<256x128xf32>
    %2 = tpu.matmul %0, %1, %cst {dimension_numbers = #tpu.dot_dimension_numbers<[1], [0], [0], [1], [0, 0, 1, 1], [], []>} : vector<256x72xf32>, vector<72x128xf32>, vector<256x128xf32> -> vector<256x128xf32>
    %c0_3 = arith.constant 0 : index
    %c0_4 = arith.constant 0 : index
    %3 = vector.load %arg3[%c0_3, %c0_4] : memref<256x128xf32, #tpu.memory_space<vmem>>, vector<256x128xf32>
    %4 = arith.mulf %2, %3 : vector<256x128xf32>
    %c0_5 = arith.constant 0 : index
    %c0_6 = arith.constant 0 : index
    %5 = vector.load %arg4[%c0_5, %c0_6] : memref<256x128xf32, #tpu.memory_space<vmem>>, vector<256x128xf32>
    tpu.vector_store %arg4[%c0_5, %c0_6], %4 {strides = array<i32>} : memref<256x128xf32, #tpu.memory_space<vmem>>, vector<256x128xf32>,
    return
  }
  func.func @transform_0(%arg0: i32) -> (i32, i32) {
    %c0_i32 = arith.constant 0 : i32
    %c0_i32_0 = arith.constant 0 : i32
    return %arg0, %c0_i32 : i32, i32
  }
  func.func @transform_1(%arg0: i32) -> (i32, i32) {
    %c0_i32 = arith.constant 0 : i32
    %c0_i32_0 = arith.constant 0 : i32
    %c0_i32_1 = arith.constant 0 : i32
    return %c0_i32, %c0_i32_0 : i32, i32
  }
  func.func @transform_2(%arg0: i32) -> (i32, i32) {
    %c0_i32 = arith.constant 0 : i32
    %c0_i32_0 = arith.constant 0 : i32
    return %arg0, %c0_i32 : i32, i32
  }
  func.func @transform_3(%arg0: i32) -> (i32, i32) {
    %c0_i32 = arith.constant 0 : i32
    %c0_i32_0 = arith.constant 0 : i32
    return %arg0, %c0_i32 : i32, i32
  }
}

module attributes {stable_mosaic.version = 11 : i64} {
  func.func @kernel(%arg0: i32, %arg1: memref<256x40xf32, #tpu.memory_space<vmem>>, %arg2: memref<40x128xf32, #tpu.memory_space<vmem>>, %arg3: memref<256x72xf32, #tpu.memory_space<vmem>>, %arg4: memref<72x128xf32, #tpu.memory_space<vmem>>, %arg5: memref<256x128xf32, #tpu.memory_space<vmem>>) attributes {dimension_semantics = [#tpu.dimension_semantics<parallel>], iteration_bounds = array<i64: 2>, scalar_prefetch = 0 : i64, scratch_operands = 0 : i64, tpu.core_type = #tpu.core_type<tc>, window_params = [{transform_indices = @transform_0, window_bounds = array<i64: 256, 40>}, {pipeline_mode = #tpu.pipeline_mode<synchronous>, transform_indices = @transform_1, window_bounds = array<i64: 40, 128>}, {transform_indices = @transform_2, window_bounds = array<i64: 256, 72>}, {pipeline_mode = #tpu.pipeline_mode<synchronous>, transform_indices = @transform_3, window_bounds = array<i64: 72, 128>}, {transform_indices = @transform_4, window_bounds = array<i64: 256, 128>}]} {
    %c0 = arith.constant 0 : index
    %c0_0 = arith.constant 0 : index
    %0 = vector.load %arg1[%c0, %c0_0] : memref<256x40xf32, #tpu.memory_space<vmem>>, vector<256x40xf32>
    %c0_1 = arith.constant 0 : index
    %c0_2 = arith.constant 0 : index
    %1 = vector.load %arg2[%c0_1, %c0_2] : memref<40x128xf32, #tpu.memory_space<vmem>>, vector<40x128xf32>
    %cst = arith.constant dense<0.000000e+00> : vector<256x128xf32>
    %2 = tpu.matmul %0, %1, %cst {dimension_numbers = #tpu.dot_dimension_numbers<[1], [0], [0], [1], [0, 0, 1, 1], [], []>} : vector<256x40xf32>, vector<40x128xf32>, vector<256x128xf32> -> vector<256x128xf32>
    %c0_3 = arith.constant 0 : index
    %c0_4 = arith.constant 0 : index
    %3 = vector.load %arg3[%c0_3, %c0_4] : memref<256x72xf32, #tpu.memory_space<vmem>>, vector<256x72xf32>
    %c0_5 = arith.constant 0 : index
    %c0_6 = arith.constant 0 : index
    %4 = vector.load %arg4[%c0_5, %c0_6] : memref<72x128xf32, #tpu.memory_space<vmem>>, vector<72x128xf32>
    %cst_7 = arith.constant dense<0.000000e+00> : vector<256x128xf32>
    %5 = tpu.matmul %3, %4, %cst_7 {dimension_numbers = #tpu.dot_dimension_numbers<[1], [0], [0], [1], [0, 0, 1, 1], [], []>} : vector<256x72xf32>, vector<72x128xf32>, vector<256x128xf32> -> vector<256x128xf32>
    %6 = arith.addf %2, %5 : vector<256x128xf32>
    %c0_8 = arith.constant 0 : index
    %c0_9 = arith.constant 0 : index
    %7 = vector.load %arg5[%c0_8, %c0_9] : memref<256x128xf32, #tpu.memory_space<vmem>>, vector<256x128xf32>
    tpu.vector_store %arg5[%c0_8, %c0_9], %6 {strides = array<i32>} : memref<256x128xf32, #tpu.memory_space<vmem>>, vector<256x128xf32>,
    return
  }
  func.func @transform_0(%arg0: i32) -> (i32, i32) {
    %c0_i32 = arith.constant 0 : i32
    %c0_i32_0 = arith.constant 0 : i32
    return %arg0, %c0_i32 : i32, i32
  }
  func.func @transform_1(%arg0: i32) -> (i32, i32) {
    %c0_i32 = arith.constant 0 : i32
    %c0_i32_0 = arith.constant 0 : i32
    %c0_i32_1 = arith.constant 0 : i32
    return %c0_i32, %c0_i32_0 : i32, i32
  }
  func.func @transform_2(%arg0: i32) -> (i32, i32) {
    %c0_i32 = arith.constant 0 : i32
    %c0_i32_0 = arith.constant 0 : i32
    return %arg0, %c0_i32 : i32, i32
  }
  func.func @transform_3(%arg0: i32) -> (i32, i32) {
    %c0_i32 = arith.constant 0 : i32
    %c0_i32_0 = arith.constant 0 : i32
    %c0_i32_1 = arith.constant 0 : i32
    return %c0_i32, %c0_i32_0 : i32, i32
  }
  func.func @transform_4(%arg0: i32) -> (i32, i32) {
    %c0_i32 = arith.constant 0 : i32
    %c0_i32_0 = arith.constant 0 : i32
    return %arg0, %c0_i32 : i32, i32
  }
}

</mosaic_0001>

<bundles_post_ra>
// kernel: forward.3
= control target key start
LH: loop header
LB: loop body
LE: loop exit
PB: predicated region body
PF: predicated region fallthrough
CT: control target
= control target key end

     0   :  { %s909_s12 = smov 0   ;;  %s1083_s0 = inlined_call_operand.vmem [shape: f32[512,40], index: 0, kind: input, shape index: {}]   ;;  %s1084_s1 = inlined_call_operand.vmem [shape: f32[40,128], index: 1, kind: input, shape index: {}]   ;;  %s1085_s2 = inlined_call_operand.vmem [shape: f32[512,128], index: 2, kind: input, shape index: {}]   ;;  %s1086_s3 = inlined_call_operand.vmem [shape: f32[512,128], index: 3, kind: output, shape index: {}]  }
   0x1 LB: > { %s719_s13 = sadd.s32 4294967295, %s887_s12   ;;  %p723_p0 = scmp.ge.s32.totalorder %s887_s12, 1  ;;  %s887_s12 = sphi %s909_s12, %s13_s12  }
   0x2   : > { %p149_p1 = scmp.lt.s32.totalorder %s887_s12, 3 }
   0x4   : > { %p150_p2 = pnand %p723_p0, %p149_p1 }
   0x5   : > { %v228_v0 = vld [vmem:[%s1084_s1] sm:$0xff] (!%p150_p2)  ;;  %v229_v1 = vld [vmem:[%s1084_s1 + $0x8] sm:$0xff] (!%p150_p2)  ;;  %v230_v2 = vld [vmem:[%s1084_s1 + $0x10] sm:$0xff] (!%p150_p2)  ;;  %s724_s20 = sshll.u32 (!%p150_p2), %s719_s13, 5  ;;  %vm233_vm0 = vcmask (!%p150_p2), 326656  }
   0x6   : > { %153 = sbr.rel (%p150_p2) target bundleno = 263 (0x107), region = 32  ;;  %v859_v3 = vpack.c.bf16 (!%p150_p2), %v229_v1, %v228_v0  ;;  %v231_v4 = vld [vmem:[%s1084_s1 + $0x18] sm:$0xff] (!%p150_p2)  ;;  %p179_p3 = scmp.lt.s32.totalorder (!%p150_p2), %s724_s20, 63  ;;  %v232_v6 = vld [vmem:[%s1084_s1 + $0x20] sm:$0xff] (!%p150_p2) }
   0x7   : > { %v863_v5 = vpack.c.bf16 (!%p150_p2), %v231_v4, %v230_v2 }
   0x8   : > { %860 = vmatprep.subr.bf16.mxu0 (!%p150_p2), %v859_v3  ;;  %867 = vmatprep.subr.bf16.mxu1 (!%p150_p2), %v859_v3 }
   0x9   : > { %862 = vmatpush3.bf16.msra.mxu0 (!%p150_p2), %v859_v3  ;;  %870 = vmatpush3.bf16.msra.mxu1 (!%p150_p2), %v859_v3 }
   0xa   : > { %864 = vmatprep.subr.bf16.mxu0 (!%p150_p2), %v863_v5  ;;  %868 = vmatprep.subr.bf16.mxu1 (!%p150_p2), %v863_v5 }
   0xd   : > { %s1088_s20 = smov (!%p179_p3, %s724_s20), 63  ;;  %866 = vmatpush3.bf16.msra.mxu0 %v863_v5  ;;  %871 = vmatpush3.bf16.msra.mxu1 %v863_v5 }
   0xe   : > { %s929_s23 = sshll.u32 %s1088_s20, 3  ;;  %809 = vmatprep.subr.mxu0 %v232_v6  ;;  %869 = vmatprep.subr.mxu1 %v232_v6 }
   0xf   : > { %s938_s28 = scalar_lea.vmem %s1083_s0, %s929_s23  ;;  %s1008_s4 = scalar_lea.vmem %s1085_s2, %s929_s23 }
  0x10   : > { %v196_v7 = vld [vmem:[%s938_s28] sm:$0xff]  ;;  %v197_v9 = vld [vmem:[%s938_s28 + $0x8] sm:$0xff]  ;;  %v198_v11 = vld [vmem:[%s938_s28 + $0x10] sm:$0xff]  ;;  %s1018_s7 = scalar_lea.vmem %s1086_s3, %s929_s23 }
  0x11   : > { %v212_v8 = vld [vmem:[%s938_s28 + $0x80] sm:$0xff]  ;;  %811 = vmatprep.mubr.msk.f32.mxu0 %vm233_vm0, %v196_v7  ;;  %v213_v10 = vld [vmem:[%s938_s28 + $0x88] sm:$0xff]  ;;  %v214_v12 = vld [vmem:[%s938_s28 + $0x90] sm:$0xff]  ;;  %810 = vmatpush3.msra.mxu0 %v232_v6 }
  0x12   : > { %835 = vmatprep.mubr.msk.f32.mxu1 %vm233_vm0, %v212_v8  ;;  %872 = vmatpush3.msra.mxu1 %v232_v6  ;;  %v199_v13 = vld [vmem:[%s938_s28 + $0x18] sm:$0xff]  ;;  %v200_v15 = vld [vmem:[%s938_s28 + $0x20] sm:$0xff]  ;;  %v201_v17 = vld [vmem:[%s938_s28 + $0x28] sm:$0xff] }
  0x13   : > { %812 = vmatmul.mubr.msk.f32.vlgmr.msra.gmra.mrb[0].mxu0 %vm233_vm0, %v197_v9  ;;  %836 = vmatmul.mubr.msk.f32.vlgmr.msra.gmra.mrb[0].mxu1 %vm233_vm0, %v213_v10  ;;  %v215_v14 = vld [vmem:[%s938_s28 + $0x98] sm:$0xff]  ;;  %v216_v16 = vld [vmem:[%s938_s28 + $0xa0] sm:$0xff]  ;;  %v217_v18 = vld [vmem:[%s938_s28 + $0xa8] sm:$0xff] }
  0x14   : > { %814 = vmatprep.mubr.msk.f32.mxu0 %vm233_vm0, %v198_v11  ;;  %838 = vmatprep.mubr.msk.f32.mxu1 %vm233_vm0, %v214_v12  ;;  %v202_v19 = vld [vmem:[%s938_s28 + $0x30] sm:$0xff]  ;;  %v203_v21 = vld [vmem:[%s938_s28 + $0x38] sm:$0xff]  ;;  %v204_v23 = vld [vmem:[%s938_s28 + $0x40] sm:$0xff] }
  0x15   : > { %v218_v20 = vld [vmem:[%s938_s28 + $0xb0] sm:$0xff]  ;;  %v219_v22 = vld [vmem:[%s938_s28 + $0xb8] sm:$0xff]  ;;  %v220_v24 = vld [vmem:[%s938_s28 + $0xc0] sm:$0xff] }
  0x16   : > { %v205_v25 = vld [vmem:[%s938_s28 + $0x48] sm:$0xff]  ;;  %v206_v27 = vld [vmem:[%s938_s28 + $0x50] sm:$0xff]  ;;  %v207_v29 = vld [vmem:[%s938_s28 + $0x58] sm:$0xff] }
  0x17   : > { %815 = vmatmul.mubr.msk.f32.gmra.mrb[2].mxu0 %vm233_vm0, %v199_v13  ;;  %839 = vmatmul.mubr.msk.f32.gmra.mrb[2].mxu1 %vm233_vm0, %v215_v14  ;;  %v221_v26 = vld [vmem:[%s938_s28 + $0xc8] sm:$0xff]  ;;  %v222_v28 = vld [vmem:[%s938_s28 + $0xd0] sm:$0xff]  ;;  %v223_v30 = vld [vmem:[%s938_s28 + $0xd8] sm:$0xff] }
  0x18   : > { %817 = vmatprep.mubr.msk.f32.mxu0 %vm233_vm0, %v200_v15  ;;  %841 = vmatprep.mubr.msk.f32.mxu1 %vm233_vm0, %v216_v16  ;;  %v208_v31 = vld [vmem:[%s938_s28 + $0x60] sm:$0xff]  ;;  %v209_v33 = vld [vmem:[%s938_s28 + $0x68] sm:$0xff]  ;;  %v210_v35 = vld [vmem:[%s938_s28 + $0x70] sm:$0xff] }
  0x19   : > { %v224_v32 = vld [vmem:[%s938_s28 + $0xe0] sm:$0xff]  ;;  %v225_v34 = vld [vmem:[%s938_s28 + $0xe8] sm:$0xff]  ;;  %v226_v36 = vld [vmem:[%s938_s28 + $0xf0] sm:$0xff] }
  0x1a   : > { %v211_v37 = vld [vmem:[%s938_s28 + $0x78] sm:$0xff]  ;;  %v556_v39 = vld [vmem:[%s1008_s4 + $0x8] sm:$0xff]  ;;  %v555_v41 = vld [vmem:[%s1008_s4] sm:$0xff] }
  0x1b   : > { %818 = vmatmul.mubr.msk.f32.gmra.mrb[4].mxu0 %vm233_vm0, %v201_v17  ;;  %842 = vmatmul.mubr.msk.f32.gmra.mrb[4].mxu1 %vm233_vm0, %v217_v18  ;;  %v227_v38 = vld [vmem:[%s938_s28 + $0xf8] sm:$0xff]  ;;  %v572_v40 = vld [vmem:[%s1008_s4 + $0x88] sm:$0xff]  ;;  %v571_v42 = vld [vmem:[%s1008_s4 + $0x80] sm:$0xff] }
  0x1c   : > { %820 = vmatprep.mubr.msk.f32.mxu0 %vm233_vm0, %v202_v19  ;;  %844 = vmatprep.mubr.msk.f32.mxu1 %vm233_vm0, %v218_v20  ;;  %v558_v51 = vld [vmem:[%s1008_s4 + $0x18] sm:$0xff]  ;;  %v557_v53 = vld [vmem:[%s1008_s4 + $0x10] sm:$0xff]  ;;  %v560_v63 = vld [vmem:[%s1008_s4 + $0x28] sm:$0xff] }
  0x1d   : > { %v574_v52 = vld [vmem:[%s1008_s4 + $0x98] sm:$0xff]  ;;  %v573_v54 = vld [vmem:[%s1008_s4 + $0x90] sm:$0xff]  ;;  %v576_v0 = vld [vmem:[%s1008_s4 + $0xa8] sm:$0xff] }
  0x1e   : > { %v559_v1 = vld [vmem:[%s1008_s4 + $0x20] sm:$0xff]  ;;  %v562_v11 = vld [vmem:[%s1008_s4 + $0x38] sm:$0xff]  ;;  %v561_v13 = vld [vmem:[%s1008_s4 + $0x30] sm:$0xff] }
  0x1f   : > { %821 = vmatmul.mubr.msk.f32.gmra.mrb[6].mxu0 %vm233_vm0, %v203_v21  ;;  %845 = vmatmul.mubr.msk.f32.gmra.mrb[6].mxu1 %vm233_vm0, %v219_v22  ;;  %v575_v2 = vld [vmem:[%s1008_s4 + $0xa0] sm:$0xff]  ;;  %v578_v12 = vld [vmem:[%s1008_s4 + $0xb8] sm:$0xff]  ;;  %v577_v14 = vld [vmem:[%s1008_s4 + $0xb0] sm:$0xff] }
  0x20   : > { %823 = vmatprep.mubr.msk.f32.mxu0 %vm233_vm0, %v204_v23  ;;  %847 = vmatprep.mubr.msk.f32.mxu1 %vm233_vm0, %v220_v24  ;;  %v564_v23 = vld [vmem:[%s1008_s4 + $0x48] sm:$0xff] }
  0x21   : > { %v580_v24 = vld [vmem:[%s1008_s4 + $0xc8] sm:$0xff] }
  0x23   : > { %824 = vmatmul.mubr.msk.f32.gmra.mrb[8].mxu0 %vm233_vm0, %v205_v25  ;;  %848 = vmatmul.mubr.msk.f32.gmra.mrb[8].mxu1 %vm233_vm0, %v221_v26  ;;  %v563_v25 = vld [vmem:[%s1008_s4 + $0x40] sm:$0xff] }
  0x24   : > { %826 = vmatprep.mubr.msk.f32.mxu0 %vm233_vm0, %v206_v27  ;;  %850 = vmatprep.mubr.msk.f32.mxu1 %vm233_vm0, %v222_v28  ;;  %v579_v26 = vld [vmem:[%s1008_s4 + $0xc0] sm:$0xff] }
  0x27   : > { %827 = vmatmul.mubr.msk.f32.gmra.mrb[10].mxu0 %vm233_vm0, %v207_v29  ;;  %851 = vmatmul.mubr.msk.f32.gmra.mrb[10].mxu1 %vm233_vm0, %v223_v30 }
  0x28   : > { %829 = vmatprep.mubr.msk.f32.mxu0 %vm233_vm0, %v208_v31  ;;  %853 = vmatprep.mubr.msk.f32.mxu1 %vm233_vm0, %v224_v32 }
  0x2b   : > { %830 = vmatmul.mubr.msk.f32.gmra.mrb[12].mxu0 %vm233_vm0, %v209_v33  ;;  %854 = vmatmul.mubr.msk.f32.gmra.mrb[12].mxu1 %vm233_vm0, %v225_v34 }
  0x2c   : > { %832 = vmatprep.mubr.msk.f32.mxu0 %vm233_vm0, %v210_v35  ;;  %856 = vmatprep.mubr.msk.f32.mxu1 %vm233_vm0, %v226_v36  ;;  %v566_v35 = vld [vmem:[%s1008_s4 + $0x58] sm:$0xff] }
  0x2d   : > { %v582_v36 = vld [vmem:[%s1008_s4 + $0xd8] sm:$0xff] }
  0x2f   : > { %833 = vmatmul.mubr.msk.f32.gmra.mrb[14].mxu0 %vm233_vm0, %v211_v37  ;;  %857 = vmatmul.mubr.msk.f32.gmra.mrb[14].mxu1 %vm233_vm0, %v227_v38  ;;  %v565_v37 = vld [vmem:[%s1008_s4 + $0x50] sm:$0xff] }
  0x30   : > { %v581_v38 = vld [vmem:[%s1008_s4 + $0xd0] sm:$0xff] }
  0xe6   : > { %v813_v43 = vpop.f32.mrb[0].mxu0  ;;  %v837_v44 = vpop.f32.mrb[0].mxu1 }
  0xe7   : > { %v588_v45 = vmul.f32 %v813_v43, %v556_v39  ;;  %v604_v46 = vmul.f32 %v837_v44, %v572_v40  ;;  %v396_v47 = vpop.f32.mrb[1].mxu0  ;;  %v476_v48 = vpop.f32.mrb[1].mxu1 }
  0xe8   : > { %v587_v49 = vmul.f32 %v555_v41, %v396_v47  ;;  %v603_v50 = vmul.f32 %v571_v42, %v476_v48  ;;  %v568_v47 = vld [vmem:[%s1008_s4 + $0x68] sm:$0xff] }
  0xe9   : > { %620 = vst [vmem:[%s1018_s7 + $0x8] sm:$0xff] %v588_v45  ;;  %636 = vst [vmem:[%s1018_s7 + $0x88] sm:$0xff] %v604_v46  ;;  %v584_v48 = vld [vmem:[%s1008_s4 + $0xe8] sm:$0xff] }
  0xea   : > { %619 = vst [vmem:[%s1018_s7] sm:$0xff] %v587_v49  ;;  %635 = vst [vmem:[%s1018_s7 + $0x80] sm:$0xff] %v603_v50  ;;  %v816_v55 = vpop.f32.mrb[2].mxu0  ;;  %v840_v56 = vpop.f32.mrb[2].mxu1  ;;  %v567_v49 = vld [vmem:[%s1008_s4 + $0x60] sm:$0xff] }
  0xeb   : > { %v590_v57 = vmul.f32 %v816_v55, %v558_v51  ;;  %v606_v58 = vmul.f32 %v840_v56, %v574_v52  ;;  %v406_v59 = vpop.f32.mrb[3].mxu0  ;;  %v486_v60 = vpop.f32.mrb[3].mxu1  ;;  %v583_v50 = vld [vmem:[%s1008_s4 + $0xe0] sm:$0xff] }
  0xec   : > { %v589_v61 = vmul.f32 %v557_v53, %v406_v59  ;;  %v605_v62 = vmul.f32 %v573_v54, %v486_v60  ;;  %v570_v59 = vld [vmem:[%s1008_s4 + $0x78] sm:$0xff] }
  0xed   : > { %622 = vst [vmem:[%s1018_s7 + $0x18] sm:$0xff] %v590_v57  ;;  %638 = vst [vmem:[%s1018_s7 + $0x98] sm:$0xff] %v606_v58  ;;  %v586_v60 = vld [vmem:[%s1008_s4 + $0xf8] sm:$0xff] }
  0xee   : > { %621 = vst [vmem:[%s1018_s7 + $0x10] sm:$0xff] %v589_v61  ;;  %637 = vst [vmem:[%s1018_s7 + $0x90] sm:$0xff] %v605_v62  ;;  %v819_v3 = vpop.f32.mrb[4].mxu0  ;;  %v843_v4 = vpop.f32.mrb[4].mxu1  ;;  %v569_v61 = vld [vmem:[%s1008_s4 + $0x70] sm:$0xff] }
  0xef   : > { %v592_v5 = vmul.f32 %v819_v3, %v560_v63  ;;  %v608_v6 = vmul.f32 %v843_v4, %v576_v0  ;;  %v416_v7 = vpop.f32.mrb[5].mxu0  ;;  %v496_v8 = vpop.f32.mrb[5].mxu1  ;;  %v585_v62 = vld [vmem:[%s1008_s4 + $0xf0] sm:$0xff] }
  0xf0   : > { %v591_v9 = vmul.f32 %v559_v1, %v416_v7  ;;  %v607_v10 = vmul.f32 %v575_v2, %v496_v8 }
  0xf1   : > { %624 = vst [vmem:[%s1018_s7 + $0x28] sm:$0xff] %v592_v5  ;;  %640 = vst [vmem:[%s1018_s7 + $0xa8] sm:$0xff] %v608_v6 }
  0xf2   : > { %623 = vst [vmem:[%s1018_s7 + $0x20] sm:$0xff] %v591_v9  ;;  %639 = vst [vmem:[%s1018_s7 + $0xa0] sm:$0xff] %v607_v10  ;;  %v822_v15 = vpop.f32.mrb[6].mxu0  ;;  %v846_v16 = vpop.f32.mrb[6].mxu1 }
  0xf3   : > { %v594_v17 = vmul.f32 %v822_v15, %v562_v11  ;;  %v610_v18 = vmul.f32 %v846_v16, %v578_v12  ;;  %v426_v19 = vpop.f32.mrb[7].mxu0  ;;  %v506_v20 = vpop.f32.mrb[7].mxu1 }
  0xf4   : > { %v593_v21 = vmul.f32 %v561_v13, %v426_v19  ;;  %v609_v22 = vmul.f32 %v577_v14, %v506_v20 }
  0xf5   : > { %626 = vst [vmem:[%s1018_s7 + $0x38] sm:$0xff] %v594_v17  ;;  %642 = vst [vmem:[%s1018_s7 + $0xb8] sm:$0xff] %v610_v18 }
  0xf6   : > { %625 = vst [vmem:[%s1018_s7 + $0x30] sm:$0xff] %v593_v21  ;;  %641 = vst [vmem:[%s1018_s7 + $0xb0] sm:$0xff] %v609_v22  ;;  %v825_v27 = vpop.f32.mrb[8].mxu0  ;;  %v849_v28 = vpop.f32.mrb[8].mxu1 }
  0xf7   : > { %v596_v29 = vmul.f32 %v825_v27, %v564_v23  ;;  %v612_v30 = vmul.f32 %v849_v28, %v580_v24  ;;  %v436_v31 = vpop.f32.mrb[9].mxu0  ;;  %v516_v32 = vpop.f32.mrb[9].mxu1 }
  0xf8   : > { %v595_v33 = vmul.f32 %v563_v25, %v436_v31  ;;  %v611_v34 = vmul.f32 %v579_v26, %v516_v32 }
  0xf9   : > { %628 = vst [vmem:[%s1018_s7 + $0x48] sm:$0xff] %v596_v29  ;;  %644 = vst [vmem:[%s1018_s7 + $0xc8] sm:$0xff] %v612_v30 }
  0xfa   : > { %627 = vst [vmem:[%s1018_s7 + $0x40] sm:$0xff] %v595_v33  ;;  %643 = vst [vmem:[%s1018_s7 + $0xc0] sm:$0xff] %v611_v34  ;;  %v828_v39 = vpop.f32.mrb[10].mxu0  ;;  %v852_v40 = vpop.f32.mrb[10].mxu1 }
  0xfb   : > { %v598_v41 = vmul.f32 %v828_v39, %v566_v35  ;;  %v614_v42 = vmul.f32 %v852_v40, %v582_v36  ;;  %v446_v43 = vpop.f32.mrb[11].mxu0  ;;  %v526_v44 = vpop.f32.mrb[11].mxu1 }
  0xfc   : > { %v597_v45 = vmul.f32 %v565_v37, %v446_v43  ;;  %v613_v46 = vmul.f32 %v581_v38, %v526_v44 }
  0xfd   : > { %630 = vst [vmem:[%s1018_s7 + $0x58] sm:$0xff] %v598_v41  ;;  %646 = vst [vmem:[%s1018_s7 + $0xd8] sm:$0xff] %v614_v42 }
  0xfe   : > { %629 = vst [vmem:[%s1018_s7 + $0x50] sm:$0xff] %v597_v45  ;;  %645 = vst [vmem:[%s1018_s7 + $0xd0] sm:$0xff] %v613_v46  ;;  %v831_v51 = vpop.f32.mrb[12].mxu0  ;;  %v855_v52 = vpop.f32.mrb[12].mxu1 }
  0xff   : > { %v600_v53 = vmul.f32 %v831_v51, %v568_v47  ;;  %v616_v54 = vmul.f32 %v855_v52, %v584_v48  ;;  %v456_v55 = vpop.f32.mrb[13].mxu0  ;;  %v536_v56 = vpop.f32.mrb[13].mxu1 }
 0x100   : > { %v599_v57 = vmul.f32 %v567_v49, %v456_v55  ;;  %v615_v58 = vmul.f32 %v583_v50, %v536_v56 }
 0x101   : > { %632 = vst [vmem:[%s1018_s7 + $0x68] sm:$0xff] %v600_v53  ;;  %648 = vst [vmem:[%s1018_s7 + $0xe8] sm:$0xff] %v616_v54 }
 0x102   : > { %631 = vst [vmem:[%s1018_s7 + $0x60] sm:$0xff] %v599_v57  ;;  %647 = vst [vmem:[%s1018_s7 + $0xe0] sm:$0xff] %v615_v58  ;;  %v834_v63 = vpop.f32.mrb[14].mxu0  ;;  %v858_v0 = vpop.f32.mrb[14].mxu1 }
 0x103   : > { %v602_v1 = vmul.f32 %v834_v63, %v570_v59  ;;  %v618_v2 = vmul.f32 %v858_v0, %v586_v60  ;;  %v466_v3 = vpop.f32.mrb[15].mxu0  ;;  %v546_v4 = vpop.f32.mrb[15].mxu1 }
 0x104   : > { %v601_v5 = vmul.f32 %v569_v61, %v466_v3  ;;  %v617_v6 = vmul.f32 %v585_v62, %v546_v4 }
 0x105   : > { %634 = vst [vmem:[%s1018_s7 + $0x78] sm:$0xff] %v602_v1  ;;  %650 = vst [vmem:[%s1018_s7 + $0xf8] sm:$0xff] %v618_v2 }
 0x106   : > { %633 = vst [vmem:[%s1018_s7 + $0x70] sm:$0xff] %v601_v5  ;;  %649 = vst [vmem:[%s1018_s7 + $0xf0] sm:$0xff] %v617_v6 }
 0x107 PF: > { %s13_s12 = sadd.s32 1, %s887_s12  }
 0x108   : > { %p10_p4 = scmp.ge.s32.totalorder %s13_s12, 4  }
 0x10a   :  { %12 = sbr.rel (!%p10_p4) target bundleno = 1 (0x1), region = 65 }

// kernel: forward.4
= control target key start
LH: loop header
LB: loop body
LE: loop exit
PB: predicated region body
PF: predicated region fallthrough
CT: control target
= control target key end

     0   :  { %s937_s12 = smov 0   ;;  %s1123_s0 = inlined_call_operand.vmem [shape: f32[512,72], index: 0, kind: input, shape index: {}]   ;;  %s1124_s1 = inlined_call_operand.vmem [shape: f32[72,128], index: 1, kind: input, shape index: {}]   ;;  %s1125_s2 = inlined_call_operand.vmem [shape: f32[512,128], index: 2, kind: input, shape index: {}]   ;;  %s1126_s3 = inlined_call_operand.vmem [shape: f32[512,128], index: 3, kind: output, shape index: {}]  }
   0x1 LB: > { %s723_s13 = sadd.s32 4294967295, %s915_s12   ;;  %p727_p0 = scmp.ge.s32.totalorder %s915_s12, 1  ;;  %s915_s12 = sphi %s937_s12, %s13_s12  }
   0x2   : > { %p149_p1 = scmp.lt.s32.totalorder %s915_s12, 3 }
   0x4   : > { %p150_p2 = pnand %p727_p0, %p149_p1 }
   0x5   : > { %v228_v0 = vld [vmem:[%s1124_s1] sm:$0xff] (!%p150_p2)  ;;  %v229_v1 = vld [vmem:[%s1124_s1 + $0x8] sm:$0xff] (!%p150_p2)  ;;  %v230_v2 = vld [vmem:[%s1124_s1 + $0x10] sm:$0xff] (!%p150_p2)  ;;  %s728_s20 = sshll.u32 (!%p150_p2), %s723_s13, 5  ;;  %vm237_vm0 = vcmask (!%p150_p2), 588800  }
   0x6   : > { %153 = sbr.rel (%p150_p2) target bundleno = 271 (0x10f), region = 32  ;;  %v875_v3 = vpack.c.bf16 (!%p150_p2), %v229_v1, %v228_v0  ;;  %v231_v4 = vld [vmem:[%s1124_s1 + $0x18] sm:$0xff] (!%p150_p2)  ;;  %p179_p3 = scmp.lt.s32.totalorder (!%p150_p2), %s728_s20, 63  ;;  %v232_v6 = vld [vmem:[%s1124_s1 + $0x20] sm:$0xff] (!%p150_p2)  ;;  %v233_v7 = vld [vmem:[%s1124_s1 + $0x28] sm:$0xff] (!%p150_p2) }
   0x7   : > { %v879_v5 = vpack.c.bf16 (!%p150_p2), %v231_v4, %v230_v2  ;;  %v883_v8 = vpack.c.bf16 (!%p150_p2), %v233_v7, %v232_v6  ;;  %v234_v9 = vld [vmem:[%s1124_s1 + $0x30] sm:$0xff] (!%p150_p2)  ;;  %v235_v10 = vld [vmem:[%s1124_s1 + $0x38] sm:$0xff] (!%p150_p2)  ;;  %v236_v14 = vld [vmem:[%s1124_s1 + $0x40] sm:$0xff] (!%p150_p2) }
   0x8   : > { %876 = vmatprep.subr.bf16.mxu0 (!%p150_p2), %v875_v3  ;;  %891 = vmatprep.subr.bf16.mxu1 (!%p150_p2), %v875_v3  ;;  %v887_v13 = vpack.c.bf16 (!%p150_p2), %v235_v10, %v234_v9 }
   0x9   : > { %878 = vmatpush3.bf16.msra.mxu0 (!%p150_p2), %v875_v3  ;;  %896 = vmatpush3.bf16.msra.mxu1 (!%p150_p2), %v875_v3 }
   0xa   : > { %880 = vmatprep.subr.bf16.mxu0 (!%p150_p2), %v879_v5  ;;  %892 = vmatprep.subr.bf16.mxu1 (!%p150_p2), %v879_v5 }
   0xd   : > { %s1128_s20 = smov (!%p179_p3, %s728_s20), 63  ;;  %882 = vmatpush3.bf16.msra.mxu0 %v879_v5  ;;  %897 = vmatpush3.bf16.msra.mxu1 %v879_v5 }
   0xe   : > { %s963_s27 = sshll.u32 %s1128_s20, 3  ;;  %884 = vmatprep.subr.bf16.mxu0 %v883_v8  ;;  %893 = vmatprep.subr.bf16.mxu1 %v883_v8 }
   0xf   : > { %s975_s7 = scalar_lea.vmem %s1123_s0, %s963_s27  ;;  %s1048_s13 = scalar_lea.vmem %s1125_s2, %s963_s27 }
  0x10   : > { %v196_v11 = vld [vmem:[%s975_s7] sm:$0xff]  ;;  %v197_v15 = vld [vmem:[%s975_s7 + $0x8] sm:$0xff]  ;;  %v198_v17 = vld [vmem:[%s975_s7 + $0x10] sm:$0xff]  ;;  %s1058_s16 = scalar_lea.vmem %s1126_s3, %s963_s27 }
  0x11   : > { %v212_v12 = vld [vmem:[%s975_s7 + $0x80] sm:$0xff]  ;;  %827 = vmatprep.mubr.msk.f32.mxu0 %vm237_vm0, %v196_v11  ;;  %886 = vmatpush3.bf16.msra.mxu0 %v883_v8  ;;  %v213_v16 = vld [vmem:[%s975_s7 + $0x88] sm:$0xff]  ;;  %v214_v18 = vld [vmem:[%s975_s7 + $0x90] sm:$0xff] }
  0x12   : > { %851 = vmatprep.mubr.msk.f32.mxu1 %vm237_vm0, %v212_v12  ;;  %898 = vmatpush3.bf16.msra.mxu1 %v883_v8  ;;  %v199_v19 = vld [vmem:[%s975_s7 + $0x18] sm:$0xff]  ;;  %v200_v21 = vld [vmem:[%s975_s7 + $0x20] sm:$0xff]  ;;  %v201_v23 = vld [vmem:[%s975_s7 + $0x28] sm:$0xff] }
  0x13   : > { %888 = vmatprep.subr.bf16.mxu0 %v887_v13  ;;  %894 = vmatprep.subr.bf16.mxu1 %v887_v13  ;;  %v215_v20 = vld [vmem:[%s975_s7 + $0x98] sm:$0xff]  ;;  %v216_v22 = vld [vmem:[%s975_s7 + $0xa0] sm:$0xff]  ;;  %v217_v24 = vld [vmem:[%s975_s7 + $0xa8] sm:$0xff] }
  0x14   : > { %v202_v25 = vld [vmem:[%s975_s7 + $0x30] sm:$0xff]  ;;  %v203_v27 = vld [vmem:[%s975_s7 + $0x38] sm:$0xff]  ;;  %v204_v29 = vld [vmem:[%s975_s7 + $0x40] sm:$0xff] }
  0x15   : > { %890 = vmatpush3.bf16.msra.mxu0 %v887_v13  ;;  %v218_v26 = vld [vmem:[%s975_s7 + $0xb0] sm:$0xff]  ;;  %v219_v28 = vld [vmem:[%s975_s7 + $0xb8] sm:$0xff]  ;;  %v220_v30 = vld [vmem:[%s975_s7 + $0xc0] sm:$0xff] }
  0x16   : > { %899 = vmatpush3.bf16.msra.mxu1 %v887_v13  ;;  %825 = vmatprep.subr.mxu0 %v236_v14  ;;  %v205_v31 = vld [vmem:[%s975_s7 + $0x48] sm:$0xff]  ;;  %v206_v33 = vld [vmem:[%s975_s7 + $0x50] sm:$0xff]  ;;  %v207_v35 = vld [vmem:[%s975_s7 + $0x58] sm:$0xff] }
  0x17   : > { %895 = vmatprep.subr.mxu1 %v236_v14  ;;  %v221_v32 = vld [vmem:[%s975_s7 + $0xc8] sm:$0xff]  ;;  %v222_v34 = vld [vmem:[%s975_s7 + $0xd0] sm:$0xff]  ;;  %v223_v36 = vld [vmem:[%s975_s7 + $0xd8] sm:$0xff] }
  0x18   : > { %v208_v37 = vld [vmem:[%s975_s7 + $0x60] sm:$0xff]  ;;  %v209_v39 = vld [vmem:[%s975_s7 + $0x68] sm:$0xff]  ;;  %v210_v41 = vld [vmem:[%s975_s7 + $0x70] sm:$0xff] }
  0x19   : > { %826 = vmatpush3.msra.mxu0 %v236_v14  ;;  %v224_v38 = vld [vmem:[%s975_s7 + $0xe0] sm:$0xff]  ;;  %v225_v40 = vld [vmem:[%s975_s7 + $0xe8] sm:$0xff]  ;;  %v226_v42 = vld [vmem:[%s975_s7 + $0xf0] sm:$0xff] }
  0x1a   : > { %900 = vmatpush3.msra.mxu1 %v236_v14  ;;  %828 = vmatmul.mubr.msk.f32.vlgmr.msra.gmra.mrb[0].mxu0 %vm237_vm0, %v197_v15  ;;  %v211_v43 = vld [vmem:[%s975_s7 + $0x78] sm:$0xff]  ;;  %v560_v45 = vld [vmem:[%s1048_s13 + $0x8] sm:$0xff]  ;;  %v559_v47 = vld [vmem:[%s1048_s13] sm:$0xff] }
  0x1b   : > { %852 = vmatmul.mubr.msk.f32.vlgmr.msra.gmra.mrb[0].mxu1 %vm237_vm0, %v213_v16  ;;  %830 = vmatprep.mubr.msk.f32.mxu0 %vm237_vm0, %v198_v17  ;;  %v227_v44 = vld [vmem:[%s975_s7 + $0xf8] sm:$0xff]  ;;  %v576_v46 = vld [vmem:[%s1048_s13 + $0x88] sm:$0xff]  ;;  %v575_v48 = vld [vmem:[%s1048_s13 + $0x80] sm:$0xff] }
  0x1c   : > { %854 = vmatprep.mubr.msk.f32.mxu1 %vm237_vm0, %v214_v18  ;;  %v562_v57 = vld [vmem:[%s1048_s13 + $0x18] sm:$0xff]  ;;  %v561_v59 = vld [vmem:[%s1048_s13 + $0x10] sm:$0xff]  ;;  %v564_v5 = vld [vmem:[%s1048_s13 + $0x28] sm:$0xff] }
  0x1d   : > { %v578_v58 = vld [vmem:[%s1048_s13 + $0x98] sm:$0xff]  ;;  %v577_v60 = vld [vmem:[%s1048_s13 + $0x90] sm:$0xff]  ;;  %v580_v6 = vld [vmem:[%s1048_s13 + $0xa8] sm:$0xff] }
  0x1e   : > { %831 = vmatmul.mubr.msk.f32.gmra.mrb[2].mxu0 %vm237_vm0, %v199_v19  ;;  %v563_v7 = vld [vmem:[%s1048_s13 + $0x20] sm:$0xff]  ;;  %v566_v17 = vld [vmem:[%s1048_s13 + $0x38] sm:$0xff]  ;;  %v565_v19 = vld [vmem:[%s1048_s13 + $0x30] sm:$0xff] }
  0x1f   : > { %855 = vmatmul.mubr.msk.f32.gmra.mrb[2].mxu1 %vm237_vm0, %v215_v20  ;;  %833 = vmatprep.mubr.msk.f32.mxu0 %vm237_vm0, %v200_v21  ;;  %v579_v8 = vld [vmem:[%s1048_s13 + $0xa0] sm:$0xff]  ;;  %v582_v18 = vld [vmem:[%s1048_s13 + $0xb8] sm:$0xff]  ;;  %v581_v20 = vld [vmem:[%s1048_s13 + $0xb0] sm:$0xff] }
  0x20   : > { %857 = vmatprep.mubr.msk.f32.mxu1 %vm237_vm0, %v216_v22 }
  0x22   : > { %834 = vmatmul.mubr.msk.f32.gmra.mrb[4].mxu0 %vm237_vm0, %v201_v23 }
  0x23   : > { %858 = vmatmul.mubr.msk.f32.gmra.mrb[4].mxu1 %vm237_vm0, %v217_v24  ;;  %836 = vmatprep.mubr.msk.f32.mxu0 %vm237_vm0, %v202_v25 }
  0x24   : > { %860 = vmatprep.mubr.msk.f32.mxu1 %vm237_vm0, %v218_v26 }
  0x26   : > { %837 = vmatmul.mubr.msk.f32.gmra.mrb[6].mxu0 %vm237_vm0, %v203_v27 }
  0x27   : > { %861 = vmatmul.mubr.msk.f32.gmra.mrb[6].mxu1 %vm237_vm0, %v219_v28  ;;  %839 = vmatprep.mubr.msk.f32.mxu0 %vm237_vm0, %v204_v29  ;;  %v568_v29 = vld [vmem:[%s1048_s13 + $0x48] sm:$0xff] }
  0x28   : > { %863 = vmatprep.mubr.msk.f32.mxu1 %vm237_vm0, %v220_v30  ;;  %v584_v30 = vld [vmem:[%s1048_s13 + $0xc8] sm:$0xff] }
  0x2a   : > { %840 = vmatmul.mubr.msk.f32.gmra.mrb[8].mxu0 %vm237_vm0, %v205_v31  ;;  %v567_v31 = vld [vmem:[%s1048_s13 + $0x40] sm:$0xff] }
  0x2b   : > { %864 = vmatmul.mubr.msk.f32.gmra.mrb[8].mxu1 %vm237_vm0, %v221_v32  ;;  %842 = vmatprep.mubr.msk.f32.mxu0 %vm237_vm0, %v206_v33  ;;  %v583_v32 = vld [vmem:[%s1048_s13 + $0xc0] sm:$0xff] }
  0x2c   : > { %866 = vmatprep.mubr.msk.f32.mxu1 %vm237_vm0, %v222_v34 }
  0x2e   : > { %843 = vmatmul.mubr.msk.f32.gmra.mrb[10].mxu0 %vm237_vm0, %v207_v35 }
  0x2f   : > { %867 = vmatmul.mubr.msk.f32.gmra.mrb[10].mxu1 %vm237_vm0, %v223_v36  ;;  %845 = vmatprep.mubr.msk.f32.mxu0 %vm237_vm0, %v208_v37 }
  0x30   : > { %869 = vmatprep.mubr.msk.f32.mxu1 %vm237_vm0, %v224_v38 }
  0x32   : > { %846 = vmatmul.mubr.msk.f32.gmra.mrb[12].mxu0 %vm237_vm0, %v209_v39 }
  0x33   : > { %870 = vmatmul.mubr.msk.f32.gmra.mrb[12].mxu1 %vm237_vm0, %v225_v40  ;;  %848 = vmatprep.mubr.msk.f32.mxu0 %vm237_vm0, %v210_v41  ;;  %v570_v41 = vld [vmem:[%s1048_s13 + $0x58] sm:$0xff] }
  0x34   : > { %872 = vmatprep.mubr.msk.f32.mxu1 %vm237_vm0, %v226_v42  ;;  %v586_v42 = vld [vmem:[%s1048_s13 + $0xd8] sm:$0xff] }
  0x36   : > { %849 = vmatmul.mubr.msk.f32.gmra.mrb[14].mxu0 %vm237_vm0, %v211_v43  ;;  %v569_v43 = vld [vmem:[%s1048_s13 + $0x50] sm:$0xff] }
  0x37   : > { %873 = vmatmul.mubr.msk.f32.gmra.mrb[14].mxu1 %vm237_vm0, %v227_v44  ;;  %v585_v44 = vld [vmem:[%s1048_s13 + $0xd0] sm:$0xff] }
  0xed   : > { %v829_v49 = vpop.f32.mrb[0].mxu0 }
  0xee   : > { %v853_v50 = vpop.f32.mrb[0].mxu1  ;;  %v592_v51 = vmul.f32 %v829_v49, %v560_v45  ;;  %v400_v53 = vpop.f32.mrb[1].mxu0 }
  0xef   : > { %v608_v52 = vmul.f32 %v853_v50, %v576_v46  ;;  %v480_v54 = vpop.f32.mrb[1].mxu1  ;;  %v591_v55 = vmul.f32 %v559_v47, %v400_v53  ;;  %v572_v53 = vld [vmem:[%s1048_s13 + $0x68] sm:$0xff] }
  0xf0   : > { %v607_v56 = vmul.f32 %v575_v48, %v480_v54  ;;  %624 = vst [vmem:[%s1058_s16 + $0x8] sm:$0xff] %v592_v51  ;;  %v588_v54 = vld [vmem:[%s1048_s13 + $0xe8] sm:$0xff] }
  0xf1   : > { %640 = vst [vmem:[%s1058_s16 + $0x88] sm:$0xff] %v608_v52  ;;  %623 = vst [vmem:[%s1058_s16] sm:$0xff] %v591_v55  ;;  %v832_v61 = vpop.f32.mrb[2].mxu0  ;;  %v571_v55 = vld [vmem:[%s1048_s13 + $0x60] sm:$0xff] }
  0xf2   : > { %639 = vst [vmem:[%s1058_s16 + $0x80] sm:$0xff] %v607_v56  ;;  %v856_v62 = vpop.f32.mrb[2].mxu1  ;;  %v594_v63 = vmul.f32 %v832_v61, %v562_v57  ;;  %v410_v1 = vpop.f32.mrb[3].mxu0  ;;  %v587_v56 = vld [vmem:[%s1048_s13 + $0xe0] sm:$0xff] }
  0xf3   : > { %v610_v0 = vmul.f32 %v856_v62, %v578_v58  ;;  %v490_v2 = vpop.f32.mrb[3].mxu1  ;;  %v593_v3 = vmul.f32 %v561_v59, %v410_v1  ;;  %v574_v1 = vld [vmem:[%s1048_s13 + $0x78] sm:$0xff] }
  0xf4   : > { %v609_v4 = vmul.f32 %v577_v60, %v490_v2  ;;  %626 = vst [vmem:[%s1058_s16 + $0x18] sm:$0xff] %v594_v63  ;;  %v590_v2 = vld [vmem:[%s1048_s13 + $0xf8] sm:$0xff] }
  0xf5   : > { %642 = vst [vmem:[%s1058_s16 + $0x98] sm:$0xff] %v610_v0  ;;  %625 = vst [vmem:[%s1058_s16 + $0x10] sm:$0xff] %v593_v3  ;;  %v835_v9 = vpop.f32.mrb[4].mxu0  ;;  %v573_v3 = vld [vmem:[%s1048_s13 + $0x70] sm:$0xff] }
  0xf6   : > { %641 = vst [vmem:[%s1058_s16 + $0x90] sm:$0xff] %v609_v4  ;;  %v859_v10 = vpop.f32.mrb[4].mxu1  ;;  %v596_v11 = vmul.f32 %v835_v9, %v564_v5  ;;  %v420_v13 = vpop.f32.mrb[5].mxu0  ;;  %v589_v4 = vld [vmem:[%s1048_s13 + $0xf0] sm:$0xff] }
  0xf7   : > { %v612_v12 = vmul.f32 %v859_v10, %v580_v6  ;;  %v500_v14 = vpop.f32.mrb[5].mxu1  ;;  %v595_v15 = vmul.f32 %v563_v7, %v420_v13 }
  0xf8   : > { %v611_v16 = vmul.f32 %v579_v8, %v500_v14  ;;  %628 = vst [vmem:[%s1058_s16 + $0x28] sm:$0xff] %v596_v11 }
  0xf9   : > { %644 = vst [vmem:[%s1058_s16 + $0xa8] sm:$0xff] %v612_v12  ;;  %627 = vst [vmem:[%s1058_s16 + $0x20] sm:$0xff] %v595_v15  ;;  %v838_v21 = vpop.f32.mrb[6].mxu0 }
  0xfa   : > { %643 = vst [vmem:[%s1058_s16 + $0xa0] sm:$0xff] %v611_v16  ;;  %v862_v22 = vpop.f32.mrb[6].mxu1  ;;  %v598_v23 = vmul.f32 %v838_v21, %v566_v17  ;;  %v430_v25 = vpop.f32.mrb[7].mxu0 }
  0xfb   : > { %v614_v24 = vmul.f32 %v862_v22, %v582_v18  ;;  %v510_v26 = vpop.f32.mrb[7].mxu1  ;;  %v597_v27 = vmul.f32 %v565_v19, %v430_v25 }
  0xfc   : > { %v613_v28 = vmul.f32 %v581_v20, %v510_v26  ;;  %630 = vst [vmem:[%s1058_s16 + $0x38] sm:$0xff] %v598_v23 }
  0xfd   : > { %646 = vst [vmem:[%s1058_s16 + $0xb8] sm:$0xff] %v614_v24  ;;  %629 = vst [vmem:[%s1058_s16 + $0x30] sm:$0xff] %v597_v27  ;;  %v841_v33 = vpop.f32.mrb[8].mxu0 }
  0xfe   : > { %645 = vst [vmem:[%s1058_s16 + $0xb0] sm:$0xff] %v613_v28  ;;  %v865_v34 = vpop.f32.mrb[8].mxu1  ;;  %v600_v35 = vmul.f32 %v841_v33, %v568_v29  ;;  %v440_v37 = vpop.f32.mrb[9].mxu0 }
  0xff   : > { %v616_v36 = vmul.f32 %v865_v34, %v584_v30  ;;  %v520_v38 = vpop.f32.mrb[9].mxu1  ;;  %v599_v39 = vmul.f32 %v567_v31, %v440_v37 }
 0x100   : > { %v615_v40 = vmul.f32 %v583_v32, %v520_v38  ;;  %632 = vst [vmem:[%s1058_s16 + $0x48] sm:$0xff] %v600_v35 }
 0x101   : > { %648 = vst [vmem:[%s1058_s16 + $0xc8] sm:$0xff] %v616_v36  ;;  %631 = vst [vmem:[%s1058_s16 + $0x40] sm:$0xff] %v599_v39  ;;  %v844_v45 = vpop.f32.mrb[10].mxu0 }
 0x102   : > { %647 = vst [vmem:[%s1058_s16 + $0xc0] sm:$0xff] %v615_v40  ;;  %v868_v46 = vpop.f32.mrb[10].mxu1  ;;  %v602_v47 = vmul.f32 %v844_v45, %v570_v41  ;;  %v450_v49 = vpop.f32.mrb[11].mxu0 }
 0x103   : > { %v618_v48 = vmul.f32 %v868_v46, %v586_v42  ;;  %v530_v50 = vpop.f32.mrb[11].mxu1  ;;  %v601_v51 = vmul.f32 %v569_v43, %v450_v49 }
 0x104   : > { %v617_v52 = vmul.f32 %v585_v44, %v530_v50  ;;  %634 = vst [vmem:[%s1058_s16 + $0x58] sm:$0xff] %v602_v47 }
 0x105   : > { %650 = vst [vmem:[%s1058_s16 + $0xd8] sm:$0xff] %v618_v48  ;;  %633 = vst [vmem:[%s1058_s16 + $0x50] sm:$0xff] %v601_v51  ;;  %v847_v57 = vpop.f32.mrb[12].mxu0 }
 0x106   : > { %649 = vst [vmem:[%s1058_s16 + $0xd0] sm:$0xff] %v617_v52  ;;  %v871_v58 = vpop.f32.mrb[12].mxu1  ;;  %v604_v59 = vmul.f32 %v847_v57, %v572_v53  ;;  %v460_v61 = vpop.f32.mrb[13].mxu0 }
 0x107   : > { %v620_v60 = vmul.f32 %v871_v58, %v588_v54  ;;  %v540_v62 = vpop.f32.mrb[13].mxu1  ;;  %v603_v63 = vmul.f32 %v571_v55, %v460_v61 }
 0x108   : > { %v619_v0 = vmul.f32 %v587_v56, %v540_v62  ;;  %636 = vst [vmem:[%s1058_s16 + $0x68] sm:$0xff] %v604_v59 }
 0x109   : > { %652 = vst [vmem:[%s1058_s16 + $0xe8] sm:$0xff] %v620_v60  ;;  %635 = vst [vmem:[%s1058_s16 + $0x60] sm:$0xff] %v603_v63  ;;  %v850_v5 = vpop.f32.mrb[14].mxu0 }
 0x10a   : > { %651 = vst [vmem:[%s1058_s16 + $0xe0] sm:$0xff] %v619_v0  ;;  %v874_v6 = vpop.f32.mrb[14].mxu1  ;;  %v606_v7 = vmul.f32 %v850_v5, %v574_v1  ;;  %v470_v9 = vpop.f32.mrb[15].mxu0 }
 0x10b   : > { %v622_v8 = vmul.f32 %v874_v6, %v590_v2  ;;  %v550_v10 = vpop.f32.mrb[15].mxu1  ;;  %v605_v11 = vmul.f32 %v573_v3, %v470_v9 }
 0x10c   : > { %v621_v12 = vmul.f32 %v589_v4, %v550_v10  ;;  %638 = vst [vmem:[%s1058_s16 + $0x78] sm:$0xff] %v606_v7 }
 0x10d   : > { %654 = vst [vmem:[%s1058_s16 + $0xf8] sm:$0xff] %v622_v8  ;;  %637 = vst [vmem:[%s1058_s16 + $0x70] sm:$0xff] %v605_v11 }
 0x10e   : > { %653 = vst [vmem:[%s1058_s16 + $0xf0] sm:$0xff] %v621_v12 }
 0x10f PF: > { %s13_s12 = sadd.s32 1, %s915_s12  }
 0x110   : > { %p10_p4 = scmp.ge.s32.totalorder %s13_s12, 4  }
 0x112   :  { %12 = sbr.rel (!%p10_p4) target bundleno = 1 (0x1), region = 65 }

// kernel: forward.5
= control target key start
LH: loop header
LB: loop body
LE: loop exit
PB: predicated region body
PF: predicated region fallthrough
CT: control target
= control target key end

     0   :  { %s1421_s15 = smov 0   ;;  %s1654_s0 = inlined_call_operand.vmem [shape: f32[512,40], index: 0, kind: input, shape index: {}]   ;;  %s1655_s1 = inlined_call_operand.vmem [shape: f32[40,128], index: 1, kind: input, shape index: {}]   ;;  %s1656_s2 = inlined_call_operand.vmem [shape: f32[512,72], index: 2, kind: input, shape index: {}]   ;;  %s1657_s3 = inlined_call_operand.vmem [shape: f32[72,128], index: 3, kind: input, shape index: {}]   ;;  %s1658_s4 = inlined_call_operand.vmem [shape: f32[512,128], index: 4, kind: output, shape index: {}]  }
   0x1 LB: > { %s1045_s16 = sadd.s32 4294967295, %s1394_s15   ;;  %p1049_p0 = scmp.ge.s32.totalorder %s1394_s15, 1  ;;  %s1394_s15 = sphi %s1421_s15, %s14_s15  }
   0x2   : > { %p174_p1 = scmp.lt.s32.totalorder %s1394_s15, 3 }
   0x4   : > { %p175_p2 = pnand %p1049_p0, %p174_p1 }
   0x5   : > { %v292_v0 = vld [vmem:[%s1657_s3] sm:$0xff] (!%p175_p2)  ;;  %v293_v1 = vld [vmem:[%s1657_s3 + $0x8] sm:$0xff] (!%p175_p2)  ;;  %v294_v2 = vld [vmem:[%s1657_s3 + $0x10] sm:$0xff] (!%p175_p2)  ;;  %s1050_s23 = sshll.u32 (!%p175_p2), %s1045_s16, 5  ;;  %vm623_vm0 = vcmask (!%p175_p2), 326656   ;;  %vm301_vm1 = vcmask (!%p175_p2), 588800  }
   0x6   : > { %178 = sbr.rel (%p175_p2) target bundleno = 302 (0x12e), region = 36  ;;  %v1324_v3 = vpack.c.bf16 (!%p175_p2), %v293_v1, %v292_v0  ;;  %v295_v4 = vld [vmem:[%s1657_s3 + $0x18] sm:$0xff] (!%p175_p2)  ;;  %v255_v5 = vld [vmem:[%s1655_s1] sm:$0xff] (!%p175_p2)  ;;  %v256_v6 = vld [vmem:[%s1655_s1 + $0x8] sm:$0xff] (!%p175_p2)  ;;  %p206_p3 = scmp.lt.s32.totalorder (!%p175_p2), %s1050_s23, 63 }
   0x7   : > { %v1328_v7 = vpack.c.bf16 (!%p175_p2), %v295_v4, %v294_v2  ;;  %v1340_v8 = vpack.c.bf16 (!%p175_p2), %v256_v6, %v255_v5  ;;  %v296_v9 = vld [vmem:[%s1657_s3 + $0x20] sm:$0xff] (!%p175_p2)  ;;  %v297_v10 = vld [vmem:[%s1657_s3 + $0x28] sm:$0xff] (!%p175_p2)  ;;  %v257_v11 = vld [vmem:[%s1655_s1 + $0x10] sm:$0xff] (!%p175_p2) }
   0x8   : > { %1325 = vmatprep.subr.bf16.mxu1 (!%p175_p2), %v1324_v3  ;;  %v258_v12 = vld [vmem:[%s1655_s1 + $0x18] sm:$0xff] (!%p175_p2)  ;;  %v1332_v14 = vpack.c.bf16 (!%p175_p2), %v297_v10, %v296_v9  ;;  %v298_v15 = vld [vmem:[%s1657_s3 + $0x30] sm:$0xff] (!%p175_p2)  ;;  %v259_v17 = vld [vmem:[%s1655_s1 + $0x20] sm:$0xff] (!%p175_p2) }
   0x9   : > { %1327 = vmatpush3.bf16.msra.mxu1 (!%p175_p2), %v1324_v3  ;;  %1341 = vmatprep.subr.bf16.mxu0 (!%p175_p2), %v1340_v8  ;;  %v1344_v13 = vpack.c.bf16 (!%p175_p2), %v258_v12, %v257_v11  ;;  %v299_v16 = vld [vmem:[%s1657_s3 + $0x38] sm:$0xff] (!%p175_p2)  ;;  %v300_v23 = vld [vmem:[%s1657_s3 + $0x40] sm:$0xff] (!%p175_p2) }
   0xa   : > { %1329 = vmatprep.subr.bf16.mxu1 (!%p175_p2), %v1328_v7  ;;  %1343 = vmatpush3.bf16.msra.mxu0 (!%p175_p2), %v1340_v8  ;;  %v1336_v20 = vpack.c.bf16 (!%p175_p2), %v299_v16, %v298_v15 }
   0xb   : > { %1345 = vmatprep.subr.bf16.mxu0 (!%p175_p2), %v1344_v13 }
   0xd   : > { %s1660_s23 = smov (!%p206_p3, %s1050_s23), 63  ;;  %1331 = vmatpush3.bf16.msra.mxu1 %v1328_v7 }
   0xe   : > { %s1459_s12 = sshll.u32 %s1660_s23, 3  ;;  %1333 = vmatprep.subr.bf16.mxu1 %v1332_v14  ;;  %1347 = vmatpush3.bf16.msra.mxu0 %v1344_v13 }
   0xf   : > { %s1471_s20 = scalar_lea.vmem %s1654_s0, %s1459_s12  ;;  %s1477_s23 = scalar_lea.vmem %s1656_s2, %s1459_s12  ;;  %1274 = vmatprep.subr.mxu0 %v259_v17 }
  0x10   : > { %v223_v18 = vld [vmem:[%s1471_s20] sm:$0xff]  ;;  %v224_v21 = vld [vmem:[%s1471_s20 + $0x8] sm:$0xff]  ;;  %v225_v22 = vld [vmem:[%s1471_s20 + $0x10] sm:$0xff]  ;;  %s1617_s30 = scalar_lea.vmem %s1658_s4, %s1459_s12 }
  0x11   : > { %v260_v19 = vld [vmem:[%s1477_s23] sm:$0xff]  ;;  %1276 = vmatprep.mubr.msk.f32.mxu0 %vm623_vm0, %v223_v18  ;;  %1335 = vmatpush3.bf16.msra.mxu1 %v1332_v14  ;;  %v226_v24 = vld [vmem:[%s1471_s20 + $0x18] sm:$0xff]  ;;  %v261_v26 = vld [vmem:[%s1477_s23 + $0x8] sm:$0xff] }
  0x12   : > { %1218 = vmatprep.mubr.msk.f32.mxu1 %vm301_vm1, %v260_v19  ;;  %1337 = vmatprep.subr.bf16.mxu1 %v1336_v20  ;;  %v227_v25 = vld [vmem:[%s1471_s20 + $0x20] sm:$0xff]  ;;  %v262_v27 = vld [vmem:[%s1477_s23 + $0x10] sm:$0xff]  ;;  %v228_v28 = vld [vmem:[%s1471_s20 + $0x28] sm:$0xff] }
  0x13   : > { %1275 = vmatpush3.msra.mxu0 %v259_v17  ;;  %v229_v29 = vld [vmem:[%s1471_s20 + $0x30] sm:$0xff]  ;;  %v263_v30 = vld [vmem:[%s1477_s23 + $0x18] sm:$0xff]  ;;  %v264_v31 = vld [vmem:[%s1477_s23 + $0x20] sm:$0xff] }
  0x14   : > { %1277 = vmatmul.mubr.msk.f32.vlgmr.msra.gmra.mrb[0].mxu0 %vm623_vm0, %v224_v21  ;;  %v230_v32 = vld [vmem:[%s1471_s20 + $0x38] sm:$0xff]  ;;  %v231_v33 = vld [vmem:[%s1471_s20 + $0x40] sm:$0xff]  ;;  %v265_v34 = vld [vmem:[%s1477_s23 + $0x28] sm:$0xff] }
  0x15   : > { %1279 = vmatprep.mubr.msk.f32.mxu0 %vm623_vm0, %v225_v22  ;;  %1339 = vmatpush3.bf16.msra.mxu1 %v1336_v20  ;;  %v266_v35 = vld [vmem:[%s1477_s23 + $0x30] sm:$0xff]  ;;  %v232_v36 = vld [vmem:[%s1471_s20 + $0x48] sm:$0xff]  ;;  %v267_v38 = vld [vmem:[%s1477_s23 + $0x38] sm:$0xff] }
  0x16   : > { %1216 = vmatprep.subr.mxu1 %v300_v23  ;;  %v233_v37 = vld [vmem:[%s1471_s20 + $0x50] sm:$0xff]  ;;  %v268_v39 = vld [vmem:[%s1477_s23 + $0x40] sm:$0xff]  ;;  %v234_v40 = vld [vmem:[%s1471_s20 + $0x58] sm:$0xff] }
  0x17   : > { %v235_v41 = vld [vmem:[%s1471_s20 + $0x60] sm:$0xff]  ;;  %v269_v42 = vld [vmem:[%s1477_s23 + $0x48] sm:$0xff]  ;;  %v270_v43 = vld [vmem:[%s1477_s23 + $0x50] sm:$0xff] }
  0x18   : > { %1280 = vmatmul.mubr.msk.f32.gmra.mrb[2].mxu0 %vm623_vm0, %v226_v24  ;;  %v236_v44 = vld [vmem:[%s1471_s20 + $0x68] sm:$0xff]  ;;  %v237_v45 = vld [vmem:[%s1471_s20 + $0x70] sm:$0xff]  ;;  %v271_v46 = vld [vmem:[%s1477_s23 + $0x58] sm:$0xff] }
  0x19   : > { %1282 = vmatprep.mubr.msk.f32.mxu0 %vm623_vm0, %v227_v25  ;;  %1217 = vmatpush3.msra.mxu1 %v300_v23  ;;  %v272_v47 = vld [vmem:[%s1477_s23 + $0x60] sm:$0xff]  ;;  %v238_v48 = vld [vmem:[%s1471_s20 + $0x78] sm:$0xff]  ;;  %v273_v50 = vld [vmem:[%s1477_s23 + $0x68] sm:$0xff] }
  0x1a   : > { %1219 = vmatmul.mubr.msk.f32.vlgmr.msra.gmra.mrb[0].mxu1 %vm301_vm1, %v261_v26  ;;  %v239_v49 = vld [vmem:[%s1471_s20 + $0x80] sm:$0xff]  ;;  %v274_v51 = vld [vmem:[%s1477_s23 + $0x70] sm:$0xff]  ;;  %v240_v52 = vld [vmem:[%s1471_s20 + $0x88] sm:$0xff] }
  0x1b   : > { %1221 = vmatprep.mubr.msk.f32.mxu1 %vm301_vm1, %v262_v27  ;;  %v241_v53 = vld [vmem:[%s1471_s20 + $0x90] sm:$0xff]  ;;  %v275_v54 = vld [vmem:[%s1477_s23 + $0x78] sm:$0xff]  ;;  %v276_v55 = vld [vmem:[%s1477_s23 + $0x80] sm:$0xff] }
  0x1c   : > { %1283 = vmatmul.mubr.msk.f32.gmra.mrb[4].mxu0 %vm623_vm0, %v228_v28  ;;  %v242_v56 = vld [vmem:[%s1471_s20 + $0x98] sm:$0xff]  ;;  %v243_v57 = vld [vmem:[%s1471_s20 + $0xa0] sm:$0xff]  ;;  %v277_v58 = vld [vmem:[%s1477_s23 + $0x88] sm:$0xff] }
  0x1d   : > { %1285 = vmatprep.mubr.msk.f32.mxu0 %vm623_vm0, %v229_v29  ;;  %v278_v59 = vld [vmem:[%s1477_s23 + $0x90] sm:$0xff]  ;;  %v244_v60 = vld [vmem:[%s1471_s20 + $0xa8] sm:$0xff]  ;;  %v279_v62 = vld [vmem:[%s1477_s23 + $0x98] sm:$0xff] }
  0x1e   : > { %1222 = vmatmul.mubr.msk.f32.gmra.mrb[2].mxu1 %vm301_vm1, %v263_v30  ;;  %v245_v61 = vld [vmem:[%s1471_s20 + $0xb0] sm:$0xff]  ;;  %v280_v63 = vld [vmem:[%s1477_s23 + $0xa0] sm:$0xff]  ;;  %v246_v0 = vld [vmem:[%s1471_s20 + $0xb8] sm:$0xff] }
  0x1f   : > { %1224 = vmatprep.mubr.msk.f32.mxu1 %vm301_vm1, %v264_v31  ;;  %v247_v1 = vld [vmem:[%s1471_s20 + $0xc0] sm:$0xff]  ;;  %v281_v2 = vld [vmem:[%s1477_s23 + $0xa8] sm:$0xff]  ;;  %v282_v3 = vld [vmem:[%s1477_s23 + $0xb0] sm:$0xff] }
  0x20   : > { %1286 = vmatmul.mubr.msk.f32.gmra.mrb[6].mxu0 %vm623_vm0, %v230_v32  ;;  %v248_v4 = vld [vmem:[%s1471_s20 + $0xc8] sm:$0xff]  ;;  %v249_v5 = vld [vmem:[%s1471_s20 + $0xd0] sm:$0xff]  ;;  %v283_v6 = vld [vmem:[%s1477_s23 + $0xb8] sm:$0xff] }
  0x21   : > { %1288 = vmatprep.mubr.msk.f32.mxu0 %vm623_vm0, %v231_v33  ;;  %v284_v7 = vld [vmem:[%s1477_s23 + $0xc0] sm:$0xff]  ;;  %v250_v8 = vld [vmem:[%s1471_s20 + $0xd8] sm:$0xff]  ;;  %v285_v10 = vld [vmem:[%s1477_s23 + $0xc8] sm:$0xff] }
  0x22   : > { %1225 = vmatmul.mubr.msk.f32.gmra.mrb[4].mxu1 %vm301_vm1, %v265_v34  ;;  %v251_v9 = vld [vmem:[%s1471_s20 + $0xe0] sm:$0xff]  ;;  %v286_v11 = vld [vmem:[%s1477_s23 + $0xd0] sm:$0xff]  ;;  %v252_v12 = vld [vmem:[%s1471_s20 + $0xe8] sm:$0xff] }
  0x23   : > { %1227 = vmatprep.mubr.msk.f32.mxu1 %vm301_vm1, %v266_v35  ;;  %v253_v13 = vld [vmem:[%s1471_s20 + $0xf0] sm:$0xff]  ;;  %v287_v14 = vld [vmem:[%s1477_s23 + $0xd8] sm:$0xff]  ;;  %v288_v15 = vld [vmem:[%s1477_s23 + $0xe0] sm:$0xff] }
  0x24   : > { %1289 = vmatmul.mubr.msk.f32.gmra.mrb[8].mxu0 %vm623_vm0, %v232_v36  ;;  %v254_v16 = vld [vmem:[%s1471_s20 + $0xf8] sm:$0xff]  ;;  %v289_v17 = vld [vmem:[%s1477_s23 + $0xe8] sm:$0xff]  ;;  %v290_v18 = vld [vmem:[%s1477_s23 + $0xf0] sm:$0xff] }
  0x25   : > { %1291 = vmatprep.mubr.msk.f32.mxu0 %vm623_vm0, %v233_v37  ;;  %v291_v19 = vld [vmem:[%s1477_s23 + $0xf8] sm:$0xff] }
  0x26   : > { %1228 = vmatmul.mubr.msk.f32.gmra.mrb[6].mxu1 %vm301_vm1, %v267_v38 }
  0x27   : > { %1230 = vmatprep.mubr.msk.f32.mxu1 %vm301_vm1, %v268_v39 }
  0x28   : > { %1292 = vmatmul.mubr.msk.f32.gmra.mrb[10].mxu0 %vm623_vm0, %v234_v40 }
  0x29   : > { %1294 = vmatprep.mubr.msk.f32.mxu0 %vm623_vm0, %v235_v41 }
  0x2a   : > { %1231 = vmatmul.mubr.msk.f32.gmra.mrb[8].mxu1 %vm301_vm1, %v269_v42 }
  0x2b   : > { %1233 = vmatprep.mubr.msk.f32.mxu1 %vm301_vm1, %v270_v43 }
  0x2c   : > { %1295 = vmatmul.mubr.msk.f32.gmra.mrb[12].mxu0 %vm623_vm0, %v236_v44 }
  0x2d   : > { %1297 = vmatprep.mubr.msk.f32.mxu0 %vm623_vm0, %v237_v45 }
  0x2e   : > { %1234 = vmatmul.mubr.msk.f32.gmra.mrb[10].mxu1 %vm301_vm1, %v271_v46 }
  0x2f   : > { %1236 = vmatprep.mubr.msk.f32.mxu1 %vm301_vm1, %v272_v47 }
  0x30   : > { %1298 = vmatmul.mubr.msk.f32.gmra.mrb[14].mxu0 %vm623_vm0, %v238_v48 }
  0x31   : > { %1300 = vmatprep.mubr.msk.f32.mxu0 %vm623_vm0, %v239_v49 }
  0x32   : > { %1237 = vmatmul.mubr.msk.f32.gmra.mrb[12].mxu1 %vm301_vm1, %v273_v50 }
  0x33   : > { %1239 = vmatprep.mubr.msk.f32.mxu1 %vm301_vm1, %v274_v51 }
  0x34   : > { %1301 = vmatmul.mubr.msk.f32.gmra.mrb[16].mxu0 %vm623_vm0, %v240_v52 }
  0x35   : > { %1303 = vmatprep.mubr.msk.f32.mxu0 %vm623_vm0, %v241_v53 }
  0x36   : > { %1240 = vmatmul.mubr.msk.f32.gmra.mrb[14].mxu1 %vm301_vm1, %v275_v54 }
  0x37   : > { %1242 = vmatprep.mubr.msk.f32.mxu1 %vm301_vm1, %v276_v55 }
  0x38   : > { %1304 = vmatmul.mubr.msk.f32.gmra.mrb[18].mxu0 %vm623_vm0, %v242_v56 }
  0x39   : > { %1306 = vmatprep.mubr.msk.f32.mxu0 %vm623_vm0, %v243_v57 }
  0x3a   : > { %1243 = vmatmul.mubr.msk.f32.gmra.mrb[16].mxu1 %vm301_vm1, %v277_v58 }
  0x3b   : > { %1245 = vmatprep.mubr.msk.f32.mxu1 %vm301_vm1, %v278_v59 }
  0x3c   : > { %1307 = vmatmul.mubr.msk.f32.gmra.mrb[20].mxu0 %vm623_vm0, %v244_v60 }
  0x3d   : > { %1309 = vmatprep.mubr.msk.f32.mxu0 %vm623_vm0, %v245_v61 }
  0x3e   : > { %1246 = vmatmul.mubr.msk.f32.gmra.mrb[18].mxu1 %vm301_vm1, %v279_v62 }
  0x3f   : > { %1248 = vmatprep.mubr.msk.f32.mxu1 %vm301_vm1, %v280_v63 }
  0x40   : > { %1310 = vmatmul.mubr.msk.f32.gmra.mrb[22].mxu0 %vm623_vm0, %v246_v0 }
  0x41   : > { %1312 = vmatprep.mubr.msk.f32.mxu0 %vm623_vm0, %v247_v1 }
  0x42   : > { %1249 = vmatmul.mubr.msk.f32.gmra.mrb[20].mxu1 %vm301_vm1, %v281_v2 }
  0x43   : > { %1251 = vmatprep.mubr.msk.f32.mxu1 %vm301_vm1, %v282_v3 }
  0x44   : > { %1313 = vmatmul.mubr.msk.f32.gmra.mrb[24].mxu0 %vm623_vm0, %v248_v4 }
  0x45   : > { %1315 = vmatprep.mubr.msk.f32.mxu0 %vm623_vm0, %v249_v5 }
  0x46   : > { %1252 = vmatmul.mubr.msk.f32.gmra.mrb[22].mxu1 %vm301_vm1, %v283_v6 }
  0x47   : > { %1254 = vmatprep.mubr.msk.f32.mxu1 %vm301_vm1, %v284_v7 }
  0x48   : > { %1316 = vmatmul.mubr.msk.f32.gmra.mrb[26].mxu0 %vm623_vm0, %v250_v8 }
  0x49   : > { %1318 = vmatprep.mubr.msk.f32.mxu0 %vm623_vm0, %v251_v9 }
  0x4a   : > { %1255 = vmatmul.mubr.msk.f32.gmra.mrb[24].mxu1 %vm301_vm1, %v285_v10 }
  0x4b   : > { %1257 = vmatprep.mubr.msk.f32.mxu1 %vm301_vm1, %v286_v11 }
  0x4c   : > { %1319 = vmatmul.mubr.msk.f32.gmra.mrb[28].mxu0 %vm623_vm0, %v252_v12 }
  0x4d   : > { %1321 = vmatprep.mubr.msk.f32.mxu0 %vm623_vm0, %v253_v13 }
  0x4e   : > { %1258 = vmatmul.mubr.msk.f32.gmra.mrb[26].mxu1 %vm301_vm1, %v287_v14 }
  0x4f   : > { %1260 = vmatprep.mubr.msk.f32.mxu1 %vm301_vm1, %v288_v15 }
  0x50   : > { %1322 = vmatmul.mubr.msk.f32.gmra.mrb[30].mxu0 %vm623_vm0, %v254_v16 }
  0x52   : > { %1261 = vmatmul.mubr.msk.f32.gmra.mrb[28].mxu1 %vm301_vm1, %v289_v17 }
  0x53   : > { %1263 = vmatprep.mubr.msk.f32.mxu1 %vm301_vm1, %v290_v18 }
  0x56   : > { %1264 = vmatmul.mubr.msk.f32.gmra.mrb[30].mxu1 %vm301_vm1, %v291_v19 }
  0xe7   : > { %v1278_v20 = vpop.f32.mrb[0].mxu0 }
  0xe8   : > { %v786_v21 = vpop.f32.mrb[1].mxu0 }
  0xeb   : > { %v1281_v22 = vpop.f32.mrb[2].mxu0 }
  0xec   : > { %v796_v23 = vpop.f32.mrb[3].mxu0 }
  0xed   : > { %v1220_v24 = vpop.f32.mrb[0].mxu1 }
  0xee   : > { %v792_v25 = vadd.f32 %v1278_v20, %v1220_v24  ;;  %v464_v26 = vpop.f32.mrb[1].mxu1 }
  0xef   : > { %v1284_v27 = vpop.f32.mrb[4].mxu0  ;;  %v787_v28 = vadd.f32 %v786_v21, %v464_v26 }
  0xf0   : > { %v806_v29 = vpop.f32.mrb[5].mxu0  ;;  %946 = vst [vmem:[%s1617_s30 + $0x8] sm:$0xff] %v792_v25 }
  0xf1   : > { %945 = vst [vmem:[%s1617_s30] sm:$0xff] %v787_v28  ;;  %v1223_v30 = vpop.f32.mrb[2].mxu1 }
  0xf2   : > { %v802_v31 = vadd.f32 %v1281_v22, %v1223_v30  ;;  %v474_v32 = vpop.f32.mrb[3].mxu1 }
  0xf3   : > { %v1287_v33 = vpop.f32.mrb[6].mxu0  ;;  %v797_v34 = vadd.f32 %v796_v23, %v474_v32 }
  0xf4   : > { %v816_v35 = vpop.f32.mrb[7].mxu0  ;;  %948 = vst [vmem:[%s1617_s30 + $0x18] sm:$0xff] %v802_v31 }
  0xf5   : > { %947 = vst [vmem:[%s1617_s30 + $0x10] sm:$0xff] %v797_v34  ;;  %v1226_v36 = vpop.f32.mrb[4].mxu1 }
  0xf6   : > { %v812_v37 = vadd.f32 %v1284_v27, %v1226_v36  ;;  %v484_v38 = vpop.f32.mrb[5].mxu1 }
  0xf7   : > { %v1290_v39 = vpop.f32.mrb[8].mxu0  ;;  %v807_v40 = vadd.f32 %v806_v29, %v484_v38 }
  0xf8   : > { %v826_v41 = vpop.f32.mrb[9].mxu0  ;;  %950 = vst [vmem:[%s1617_s30 + $0x28] sm:$0xff] %v812_v37 }
  0xf9   : > { %949 = vst [vmem:[%s1617_s30 + $0x20] sm:$0xff] %v807_v40  ;;  %v1229_v42 = vpop.f32.mrb[6].mxu1 }
  0xfa   : > { %v822_v43 = vadd.f32 %v1287_v33, %v1229_v42  ;;  %v494_v44 = vpop.f32.mrb[7].mxu1 }
  0xfb   : > { %v1293_v45 = vpop.f32.mrb[10].mxu0  ;;  %v817_v46 = vadd.f32 %v816_v35, %v494_v44 }
  0xfc   : > { %v836_v47 = vpop.f32.mrb[11].mxu0  ;;  %952 = vst [vmem:[%s1617_s30 + $0x38] sm:$0xff] %v822_v43 }
  0xfd   : > { %951 = vst [vmem:[%s1617_s30 + $0x30] sm:$0xff] %v817_v46  ;;  %v1232_v48 = vpop.f32.mrb[8].mxu1 }
  0xfe   : > { %v832_v49 = vadd.f32 %v1290_v39, %v1232_v48  ;;  %v504_v50 = vpop.f32.mrb[9].mxu1 }
  0xff   : > { %v1296_v51 = vpop.f32.mrb[12].mxu0  ;;  %v827_v52 = vadd.f32 %v826_v41, %v504_v50 }
 0x100   : > { %v846_v53 = vpop.f32.mrb[13].mxu0  ;;  %954 = vst [vmem:[%s1617_s30 + $0x48] sm:$0xff] %v832_v49 }
 0x101   : > { %953 = vst [vmem:[%s1617_s30 + $0x40] sm:$0xff] %v827_v52  ;;  %v1235_v54 = vpop.f32.mrb[10].mxu1 }
 0x102   : > { %v842_v55 = vadd.f32 %v1293_v45, %v1235_v54  ;;  %v514_v56 = vpop.f32.mrb[11].mxu1 }
 0x103   : > { %v1299_v57 = vpop.f32.mrb[14].mxu0  ;;  %v837_v58 = vadd.f32 %v836_v47, %v514_v56 }
 0x104   : > { %v856_v59 = vpop.f32.mrb[15].mxu0  ;;  %956 = vst [vmem:[%s1617_s30 + $0x58] sm:$0xff] %v842_v55 }
 0x105   : > { %955 = vst [vmem:[%s1617_s30 + $0x50] sm:$0xff] %v837_v58  ;;  %v1238_v60 = vpop.f32.mrb[12].mxu1 }
 0x106   : > { %v852_v61 = vadd.f32 %v1296_v51, %v1238_v60  ;;  %v524_v62 = vpop.f32.mrb[13].mxu1 }
 0x107   : > { %v1302_v63 = vpop.f32.mrb[16].mxu0  ;;  %v847_v0 = vadd.f32 %v846_v53, %v524_v62 }
 0x108   : > { %v866_v1 = vpop.f32.mrb[17].mxu0  ;;  %958 = vst [vmem:[%s1617_s30 + $0x68] sm:$0xff] %v852_v61 }
 0x109   : > { %957 = vst [vmem:[%s1617_s30 + $0x60] sm:$0xff] %v847_v0  ;;  %v1241_v2 = vpop.f32.mrb[14].mxu1 }
 0x10a   : > { %v862_v3 = vadd.f32 %v1299_v57, %v1241_v2  ;;  %v534_v4 = vpop.f32.mrb[15].mxu1 }
 0x10b   : > { %v1305_v5 = vpop.f32.mrb[18].mxu0  ;;  %v857_v6 = vadd.f32 %v856_v59, %v534_v4 }
 0x10c   : > { %v876_v7 = vpop.f32.mrb[19].mxu0  ;;  %960 = vst [vmem:[%s1617_s30 + $0x78] sm:$0xff] %v862_v3 }
 0x10d   : > { %959 = vst [vmem:[%s1617_s30 + $0x70] sm:$0xff] %v857_v6  ;;  %v1244_v8 = vpop.f32.mrb[16].mxu1 }
 0x10e   : > { %v872_v9 = vadd.f32 %v1302_v63, %v1244_v8  ;;  %v544_v10 = vpop.f32.mrb[17].mxu1 }
 0x10f   : > { %v1308_v11 = vpop.f32.mrb[20].mxu0  ;;  %v867_v12 = vadd.f32 %v866_v1, %v544_v10 }
 0x110   : > { %v886_v13 = vpop.f32.mrb[21].mxu0  ;;  %962 = vst [vmem:[%s1617_s30 + $0x88] sm:$0xff] %v872_v9 }
 0x111   : > { %961 = vst [vmem:[%s1617_s30 + $0x80] sm:$0xff] %v867_v12  ;;  %v1247_v14 = vpop.f32.mrb[18].mxu1 }
 0x112   : > { %v882_v15 = vadd.f32 %v1305_v5, %v1247_v14  ;;  %v554_v16 = vpop.f32.mrb[19].mxu1 }
 0x113   : > { %v1311_v17 = vpop.f32.mrb[22].mxu0  ;;  %v877_v18 = vadd.f32 %v876_v7, %v554_v16 }
 0x114   : > { %v896_v19 = vpop.f32.mrb[23].mxu0  ;;  %964 = vst [vmem:[%s1617_s30 + $0x98] sm:$0xff] %v882_v15 }
 0x115   : > { %963 = vst [vmem:[%s1617_s30 + $0x90] sm:$0xff] %v877_v18  ;;  %v1250_v20 = vpop.f32.mrb[20].mxu1 }
 0x116   : > { %v892_v21 = vadd.f32 %v1308_v11, %v1250_v20  ;;  %v564_v22 = vpop.f32.mrb[21].mxu1 }
 0x117   : > { %v1314_v23 = vpop.f32.mrb[24].mxu0  ;;  %v887_v24 = vadd.f32 %v886_v13, %v564_v22 }
 0x118   : > { %v906_v25 = vpop.f32.mrb[25].mxu0  ;;  %966 = vst [vmem:[%s1617_s30 + $0xa8] sm:$0xff] %v892_v21 }
 0x119   : > { %965 = vst [vmem:[%s1617_s30 + $0xa0] sm:$0xff] %v887_v24  ;;  %v1253_v26 = vpop.f32.mrb[22].mxu1 }
 0x11a   : > { %v902_v27 = vadd.f32 %v1311_v17, %v1253_v26  ;;  %v574_v28 = vpop.f32.mrb[23].mxu1 }
 0x11b   : > { %v1317_v29 = vpop.f32.mrb[26].mxu0  ;;  %v897_v30 = vadd.f32 %v896_v19, %v574_v28 }
 0x11c   : > { %v916_v31 = vpop.f32.mrb[27].mxu0  ;;  %968 = vst [vmem:[%s1617_s30 + $0xb8] sm:$0xff] %v902_v27 }
 0x11d   : > { %967 = vst [vmem:[%s1617_s30 + $0xb0] sm:$0xff] %v897_v30  ;;  %v1256_v32 = vpop.f32.mrb[24].mxu1 }
 0x11e   : > { %v912_v33 = vadd.f32 %v1314_v23, %v1256_v32  ;;  %v584_v34 = vpop.f32.mrb[25].mxu1 }
 0x11f   : > { %v1320_v35 = vpop.f32.mrb[28].mxu0  ;;  %v907_v36 = vadd.f32 %v906_v25, %v584_v34 }
 0x120   : > { %v926_v37 = vpop.f32.mrb[29].mxu0  ;;  %970 = vst [vmem:[%s1617_s30 + $0xc8] sm:$0xff] %v912_v33 }
 0x121   : > { %969 = vst [vmem:[%s1617_s30 + $0xc0] sm:$0xff] %v907_v36  ;;  %v1259_v38 = vpop.f32.mrb[26].mxu1 }
 0x122   : > { %v922_v39 = vadd.f32 %v1317_v29, %v1259_v38  ;;  %v594_v40 = vpop.f32.mrb[27].mxu1 }
 0x123   : > { %v1323_v41 = vpop.f32.mrb[30].mxu0  ;;  %v917_v42 = vadd.f32 %v916_v31, %v594_v40 }
 0x124   : > { %v936_v43 = vpop.f32.mrb[31].mxu0  ;;  %972 = vst [vmem:[%s1617_s30 + $0xd8] sm:$0xff] %v922_v39 }
 0x125   : > { %971 = vst [vmem:[%s1617_s30 + $0xd0] sm:$0xff] %v917_v42  ;;  %v1262_v44 = vpop.f32.mrb[28].mxu1 }
 0x126   : > { %v932_v45 = vadd.f32 %v1320_v35, %v1262_v44  ;;  %v604_v46 = vpop.f32.mrb[29].mxu1 }
 0x127   : > { %v927_v47 = vadd.f32 %v926_v37, %v604_v46 }
 0x128   : > { %974 = vst [vmem:[%s1617_s30 + $0xe8] sm:$0xff] %v932_v45 }
 0x129   : > { %973 = vst [vmem:[%s1617_s30 + $0xe0] sm:$0xff] %v927_v47  ;;  %v1265_v48 = vpop.f32.mrb[30].mxu1 }
 0x12a   : > { %v942_v49 = vadd.f32 %v1323_v41, %v1265_v48  ;;  %v614_v50 = vpop.f32.mrb[31].mxu1 }
 0x12b   : > { %v937_v51 = vadd.f32 %v936_v43, %v614_v50 }
 0x12c   : > { %976 = vst [vmem:[%s1617_s30 + $0xf8] sm:$0xff] %v942_v49 }
 0x12d   : > { %975 = vst [vmem:[%s1617_s30 + $0xf0] sm:$0xff] %v937_v51 }
 0x12e PF: > { %s14_s15 = sadd.s32 1, %s1394_s15  }
 0x12f   : > { %p11_p4 = scmp.ge.s32.totalorder %s14_s15, 4  }
 0x131   :  { %13 = sbr.rel (!%p11_p4) target bundleno = 1 (0x1), region = 69 }

</bundles_post_ra>
